<compile_context>
chip_gen: v7x
topology: tpu7x:2x2x1
jax: 0.10.0
libtpu: 0.0.40
codegen_flags: <defaults>
</compile_context>

<pallas_src>
import functools

import jax
import jax.numpy as jnp
from jax import lax
from jax.experimental import pallas as pl
from jax.experimental.pallas import tpu as pltpu

_EPS = 1e-5  # torch.nn.LayerNorm default eps


def _pick_tile(dim, cap, quantum):
    """Largest divisor of `dim` that is <= cap and a multiple of `quantum`.

    Fails loudly instead of silently falling back to one huge block."""
    if dim <= cap:
        return dim
    t = (min(dim, cap) // quantum) * quantum
    while t >= quantum:
        if dim % t == 0:
            return t
        t -= quantum
    raise ValueError(
        f"dim={dim} has no tile <= {cap} that is a multiple of {quantum}; "
        "pad the array or adjust tiling caps.")


def _vmem_limit(nbytes):
    # Derived from the per-call tile math, with double-buffer headroom, and
    # capped well under v7x's 64 MiB physical VMEM.
    return int(min(max(2 * nbytes, 8 << 20), 44 << 20))


# ---------------------------------------------------------------------------
# Plain linear (x @ W + b) — used only for the fused QKV projection.
# ---------------------------------------------------------------------------
def _linear_kernel(x_ref, w_ref, b_ref, o_ref, acc_ref):
    @pl.when(pl.program_id(2) == 0)
    def _():
        acc_ref[...] = jnp.zeros_like(acc_ref)

    acc_ref[...] += jnp.dot(x_ref[...], w_ref[...],
                            preferred_element_type=jnp.float32)

    @pl.when(pl.program_id(2) == pl.num_programs(2) - 1)
    def _():
        o_ref[...] = (acc_ref[...]
                      + b_ref[...].astype(jnp.float32)).astype(o_ref.dtype)


def linear(x2, w, b):
    """x2: (M, K); w: (K, N); b: (N,) -> x2 @ w + b."""
    M, K = x2.shape
    K2, N = w.shape
    assert K == K2 and b.shape == (N,)
    # quantum 128 fills v5e's 128-wide MXU; caps at 512 give 256-aligned tiles
    # (v6e/v7x MXU shape) when the dims allow it and amortize per-step overhead.
    tm = _pick_tile(M, 512, 8)
    tk = _pick_tile(K, 512, 128)
    tn = _pick_tile(N, 512, 128)
    grid = (M // tm, N // tn, K // tk)
    b2 = b.reshape(1, N).astype(jnp.float32)
    need = 4 * (2 * (tm * tk + tk * tn + tn) + 3 * tm * tn)
    return pl.pallas_call(
        _linear_kernel,
        out_shape=jax.ShapeDtypeStruct((M, N), x2.dtype),
        grid=grid,
        in_specs=[
            pl.BlockSpec((tm, tk), lambda i, j, k: (i, k)),
            pl.BlockSpec((tk, tn), lambda i, j, k: (k, j)),
            pl.BlockSpec((1, tn), lambda i, j, k: (0, j)),
        ],
        out_specs=pl.BlockSpec((tm, tn), lambda i, j, k: (i, j)),
        scratch_shapes=[pltpu.VMEM((tm, tn), jnp.float32)],
        compiler_params=pltpu.CompilerParams(
            dimension_semantics=("parallel", "parallel", "arbitrary"),
            vmem_limit_bytes=_vmem_limit(need),
        ),
        cost_estimate=pl.CostEstimate(
            flops=2 * M * N * K,
            transcendentals=0,
            bytes_accessed=(M * K + K * N + M * N) * x2.dtype.itemsize + 4 * N),
    )(x2, w, b2)


# ---------------------------------------------------------------------------
# Attention: per-batch grid step, in-kernel head split (all heads batched).
# ---------------------------------------------------------------------------
def _attention_kernel(qkv_ref, o_ref, *, heads, scale):
    S, E = o_ref.shape
    hd = E // heads
    qkv = qkv_ref[...]                                      # (S, 3E), native dtype
    # Fold 1/sqrt(hd) into q: touches S*E elements instead of H*S*S scores.
    q = (qkv[:, :E] * jnp.asarray(scale, qkv.dtype)).reshape(S, heads, hd)
    k = qkv[:, E:2 * E].reshape(S, heads, hd)
    v = qkv[:, 2 * E:].reshape(S, heads, hd)
    # All heads of one batch element in one batched MXU contraction.
    s = jnp.einsum("qhd,khd->hqk", q, k,
                   preferred_element_type=jnp.float32)      # (H, S, S) f32 stats
    m = jnp.max(s, axis=-1, keepdims=True)
    p = jnp.exp(s - m)
    denom = jnp.sum(p, axis=-1, keepdims=True)
    p = p * pl.reciprocal(denom, approx=True)               # EUP, not VALU divide
    out = jnp.einsum("hqk,khd->qhd", p.astype(qkv.dtype), v,
                     preferred_element_type=jnp.float32)    # (S, H, hd)
    o_ref[...] = out.reshape(S, E).astype(o_ref.dtype)


def attention(qkv3, heads):
    """qkv3: (B, S, 3E) fused projections -> (B, S, E) attention output."""
    B, S, E3 = qkv3.shape
    E = E3 // 3
    hd = E // heads
    scale = 1.0 / (hd ** 0.5)
    # grid=(B,) keeps >=2 parallel steps per chip (megacore on v7x) at B>=2.
    need = 4 * (2 * (S * E3 + S * E) + 3 * heads * S * S)
    return pl.pallas_call(
        functools.partial(_attention_kernel, heads=heads, scale=scale),
        out_shape=jax.ShapeDtypeStruct((B, S, E), qkv3.dtype),
        grid=(B,),
        in_specs=[pl.BlockSpec((None, S, E3), lambda b: (b, 0, 0))],
        out_specs=pl.BlockSpec((None, S, E), lambda b: (b, 0, 0)),
        compiler_params=pltpu.CompilerParams(
            dimension_semantics=("parallel",),
            vmem_limit_bytes=_vmem_limit(need),
        ),
        cost_estimate=pl.CostEstimate(
            flops=4 * B * S * S * E,
            transcendentals=B * heads * S * S,
            bytes_accessed=(B * S * E3 + B * S * E) * qkv3.dtype.itemsize),
    )(qkv3)


# ---------------------------------------------------------------------------
# Out-projection fused with AddNorm: residual + LayerNorm(x @ W + b).
# ---------------------------------------------------------------------------
def _linear_addnorm_kernel(x_ref, w_ref, b_ref, res_ref, g_ref, bt_ref,
                           o_ref, acc_ref):
    k = pl.program_id(1)

    @pl.when(k == 0)
    def _():
        acc_ref[...] = jnp.zeros_like(acc_ref)

    acc_ref[...] += jnp.dot(x_ref[...], w_ref[...],
                            preferred_element_type=jnp.float32)

    @pl.when(k == pl.num_programs(1) - 1)
    def _():
        y = acc_ref[...] + b_ref[...].astype(jnp.float32)
        # LayerNorm over the full (lane-dense) feature dim, two-pass variance.
        mean = jnp.mean(y, axis=-1, keepdims=True)
        c = y - mean
        var = jnp.mean(c * c, axis=-1, keepdims=True)
        z = c * lax.rsqrt(var + _EPS) * g_ref[...] + bt_ref[...]
        o_ref[...] = (res_ref[...].astype(jnp.float32) + z).astype(o_ref.dtype)


def linear_addnorm(x2, w, b, residual, gamma, beta):
    """residual + LayerNorm(x2 @ w + b). x2: (M, K); w: (K, N); residual: (M, N)."""
    M, K = x2.shape
    K2, N = w.shape
    assert K == K2 and residual.shape == (M, N)
    tm = _pick_tile(M, 256, 8)        # keeps the (tm, N) f32 accumulator modest
    tk = _pick_tile(K, 512, 128)
    grid = (M // tm, K // tk)
    b2 = b.reshape(1, N).astype(jnp.float32)
    g2 = gamma.reshape(1, N).astype(jnp.float32)
    bt2 = beta.reshape(1, N).astype(jnp.float32)
    need = 4 * (2 * (tm * tk + tk * N + 2 * tm * N) + tm * N + 3 * N)
    return pl.pallas_call(
        _linear_addnorm_kernel,
        out_shape=jax.ShapeDtypeStruct((M, N), x2.dtype),
        grid=grid,
        in_specs=[
            pl.BlockSpec((tm, tk), lambda i, k: (i, k)),
            pl.BlockSpec((tk, N), lambda i, k: (k, 0)),
            pl.BlockSpec((1, N), lambda i, k: (0, 0)),
            pl.BlockSpec((tm, N), lambda i, k: (i, 0)),
            pl.BlockSpec((1, N), lambda i, k: (0, 0)),
            pl.BlockSpec((1, N), lambda i, k: (0, 0)),
        ],
        out_specs=pl.BlockSpec((tm, N), lambda i, k: (i, 0)),
        scratch_shapes=[pltpu.VMEM((tm, N), jnp.float32)],
        compiler_params=pltpu.CompilerParams(
            dimension_semantics=("parallel", "arbitrary"),
            vmem_limit_bytes=_vmem_limit(need),
        ),
        cost_estimate=pl.CostEstimate(
            flops=2 * M * N * K + 10 * M * N,
            transcendentals=M,
            bytes_accessed=(M * K + K * N + 2 * M * N) * x2.dtype.itemsize),
    )(x2, w, b2, residual, g2, bt2)


# ---------------------------------------------------------------------------
# FeedForward (fc1 -> ReLU -> fc2) fused with AddNorm2; hidden stays in VMEM.
# ---------------------------------------------------------------------------
def _ffn_addnorm_kernel(x_ref, w1_ref, b1_ref, w2_ref, b2_ref, g_ref, bt_ref,
                        o_ref, acc_ref):
    f = pl.program_id(1)

    @pl.when(f == 0)
    def _():
        acc_ref[...] = jnp.zeros_like(acc_ref)

    # (tm, tf) hidden slice is computed, ReLU'd and consumed entirely in VMEM.
    h = jnp.dot(x_ref[...], w1_ref[...], preferred_element_type=jnp.float32)
    h = jnp.maximum(h + b1_ref[...].astype(jnp.float32), 0.0)
    acc_ref[...] += jnp.dot(h.astype(w2_ref.dtype), w2_ref[...],
                            preferred_element_type=jnp.float32)

    @pl.when(f == pl.num_programs(1) - 1)
    def _():
        y = acc_ref[...] + b2_ref[...].astype(jnp.float32)
        mean = jnp.mean(y, axis=-1, keepdims=True)
        c = y - mean
        var = jnp.mean(c * c, axis=-1, keepdims=True)
        z = c * lax.rsqrt(var + _EPS) * g_ref[...] + bt_ref[...]
        # x is both the fc1 input and the AddNorm residual -> reuse the resident
        # block, no extra HBM pass.
        o_ref[...] = (x_ref[...].astype(jnp.float32) + z).astype(o_ref.dtype)


def ffn_addnorm(x2, w1, b1, w2, b2, gamma, beta):
    """x2 + LayerNorm(ReLU(x2 @ w1 + b1) @ w2 + b2); hidden never hits HBM."""
    M, E = x2.shape
    E1, F = w1.shape
    F2, E2 = w2.shape
    assert E == E1 and F == F2 and E == E2
    tm = _pick_tile(M, 256, 8)
    tf = _pick_tile(F, 512, 128)
    grid = (M // tm, F // tf)
    b1_2 = b1.reshape(1, F).astype(jnp.float32)
    b2_2 = b2.reshape(1, E).astype(jnp.float32)
    g2 = gamma.reshape(1, E).astype(jnp.float32)
    bt2 = beta.reshape(1, E).astype(jnp.float32)
    need = 4 * (2 * (2 * tm * E + E * tf + tf * E) + tm * E + tm * tf
                + 3 * E + tf)
    return pl.pallas_call(
        _ffn_addnorm_kernel,
        out_shape=jax.ShapeDtypeStruct((M, E), x2.dtype),
        grid=grid,
        in_specs=[
            pl.BlockSpec((tm, E), lambda i, f: (i, 0)),
            pl.BlockSpec((E, tf), lambda i, f: (0, f)),
            pl.BlockSpec((1, tf), lambda i, f: (0, f)),
            pl.BlockSpec((tf, E), lambda i, f: (f, 0)),
            pl.BlockSpec((1, E), lambda i, f: (0, 0)),
            pl.BlockSpec((1, E), lambda i, f: (0, 0)),
            pl.BlockSpec((1, E), lambda i, f: (0, 0)),
        ],
        out_specs=pl.BlockSpec((tm, E), lambda i, f: (i, 0)),
        scratch_shapes=[pltpu.VMEM((tm, E), jnp.float32)],
        compiler_params=pltpu.CompilerParams(
            dimension_semantics=("parallel", "arbitrary"),
            vmem_limit_bytes=_vmem_limit(need),
        ),
        cost_estimate=pl.CostEstimate(
            flops=4 * M * F * E + 12 * M * E,
            transcendentals=M,
            bytes_accessed=(2 * M * E + 2 * E * F) * x2.dtype.itemsize),
    )(x2, w1, b1_2, w2, b2_2, g2, bt2)


# ---------------------------------------------------------------------------
# EncoderLayer forward (4 pallas_calls, no HBM transposes)
# ---------------------------------------------------------------------------
def encoder_layer(enc_inputs, params):
    B, S, E = enc_inputs.shape
    heads = params["heads"]
    R = B * S
    x2 = enc_inputs.reshape(R, E)

    # multi-head self-attention: fused QKV projection (one pass over x2)
    w_qkv = jnp.concatenate([params["wq"], params["wk"], params["wv"]], axis=1)
    b_qkv = jnp.concatenate([params["bq"], params["bk"], params["bv"]], axis=0)
    qkv = linear(x2, w_qkv, b_qkv)                        # (R, 3E)
    attn = attention(qkv.reshape(B, S, 3 * E), heads)     # (B, S, E), heads split in-kernel

    # out-projection fused with AddNorm1
    x = linear_addnorm(attn.reshape(R, E), params["wo"], params["bo"],
                       x2, params["ln1_g"], params["ln1_b"])

    # feed-forward fused with AddNorm2
    out = ffn_addnorm(x, params["w1"], params["b1"],
                      params["w2"], params["b2"],
                      params["ln2_g"], params["ln2_b"])
    return out.reshape(B, S, E)


# Pure-JAX reference (matches the PyTorch forward semantics, eval mode).
def encoder_layer_ref(enc_inputs, params):
    hp = lax.Precision.HIGHEST
    B, S, E = enc_inputs.shape
    n_heads = params["heads"]
    hd = E // n_heads

    def lin(a, w, b):
        return jnp.dot(a, w, precision=hp) + b

    def layer_norm(t, g, bt):
        m = jnp.mean(t, axis=-1, keepdims=True)
        var = jnp.mean((t - m) ** 2, axis=-1, keepdims=True)
        return (t - m) * lax.rsqrt(var + _EPS) * g + bt

    q = lin(enc_inputs, params["wq"], params["bq"])
    k = lin(enc_inputs, params["wk"], params["bk"])
    v = lin(enc_inputs, params["wv"], params["bv"])

    def to_heads(t):
        return t.reshape(B, S, n_heads, hd).transpose(0, 2, 1, 3)

    qh, kh, vh = to_heads(q), to_heads(k), to_heads(v)
    s = jnp.einsum("bhqd,bhkd->bhqk", qh, kh, precision=hp) / (hd ** 0.5)
    attn = jax.nn.softmax(s, axis=-1)
    o = jnp.einsum("bhqk,bhkd->bhqd", attn, vh, precision=hp)
    o = o.transpose(0, 2, 1, 3).reshape(B, S, E)
    o = lin(o, params["wo"], params["bo"])

    x = enc_inputs + layer_norm(o, params["ln1_g"], params["ln1_b"])
    h = jnp.maximum(lin(x, params["w1"], params["b1"]), 0.0)
    y = lin(h, params["w2"], params["b2"])
    return x + layer_norm(y, params["ln2_g"], params["ln2_b"])


if __name__ == "__main__":
    # Small, lane-dense shapes consistent with EncoderLayer(embed_size, heads).
    # (The module's own constants are B=3, S=192, E=1024, heads=4, F=2048.)
    B, S, E, n_heads, F = 2, 128, 256, 4, 512

    key = jax.random.PRNGKey(0)
    ks = jax.random.split(key, 17)

    def w(k_, shape, scale=0.05):
        return (scale * jax.random.normal(k_, shape)).astype(jnp.float32)

    params = {
        "heads": n_heads,
        "wq": w(ks[0], (E, E)), "bq": w(ks[1], (E,)),
        "wk": w(ks[2], (E, E)), "bk": w(ks[3], (E,)),
        "wv": w(ks[4], (E, E)), "bv": w(ks[5], (E,)),
        "wo": w(ks[6], (E, E)), "bo": w(ks[7], (E,)),
        "w1": w(ks[8], (E, F)), "b1": w(ks[9], (F,)),
        "w2": w(ks[10], (F, E)), "b2": w(ks[11], (E,)),
        "ln1_g": (1.0 + 0.1 * jax.random.normal(ks[12], (E,))).astype(jnp.float32),
        "ln1_b": (0.1 * jax.random.normal(ks[13], (E,))).astype(jnp.float32),
        "ln2_g": (1.0 + 0.1 * jax.random.normal(ks[14], (E,))).astype(jnp.float32),
        "ln2_b": (0.1 * jax.random.normal(ks[15], (E,))).astype(jnp.float32),
    }

    enc_inputs = jax.random.normal(ks[16], (B, S, E), dtype=jnp.float32)

    out = encoder_layer(enc_inputs, params)
    out = jax.block_until_ready(out)

    ref = encoder_layer_ref(enc_inputs, params)
    assert out.shape == (B, S, E)
    err = float(jnp.max(jnp.abs(out - ref)))
    assert jnp.allclose(out, ref, atol=2e-2, rtol=2e-2), err

    print("KERNEL_OK")
</pallas_src>

<mosaic_0001>
module attributes {stable_mosaic.version = 11 : i64} {
  func.func @_linear_kernel(%arg0: i32, %arg1: i32, %arg2: i32, %arg3: memref<256x256xf32, #tpu.memory_space<vmem>>, %arg4: memref<256x384xf32, #tpu.memory_space<vmem>>, %arg5: memref<1x384xf32, #tpu.memory_space<vmem>>, %arg6: memref<256x384xf32, #tpu.memory_space<vmem>>, %arg7: memref<256x384xf32, #tpu.memory_space<vmem>>) attributes {dimension_semantics = [#tpu.dimension_semantics<parallel>, #tpu.dimension_semantics<parallel>, #tpu.dimension_semantics<arbitrary>], iteration_bounds = array<i64: 1, 2, 1>, scalar_prefetch = 0 : i64, scratch_operands = 1 : i64, tpu.core_type = #tpu.core_type<tc>, window_params = [{transform_indices = @transform_0, window_bounds = array<i64: 256, 256>}, {transform_indices = @transform_1, window_bounds = array<i64: 256, 384>}, {transform_indices = @transform_2, window_bounds = array<i64: 1, 384>}, {transform_indices = @transform_3, window_bounds = array<i64: 256, 384>}]} {
    %c0_i32 = arith.constant 0 : i32
    %0 = arith.cmpi eq, %arg2, %c0_i32 : i32
    %1 = arith.extui %0 : i1 to i32
    %c0_i32_0 = arith.constant 0 : i32
    %2 = arith.cmpi ne, %1, %c0_i32_0 : i32
    scf.if %2 {
      %cst_10 = arith.constant 0.000000e+00 : f32
      %12 = vector.broadcast %cst_10 : f32 to vector<256x384xf32>
      %c0_11 = arith.constant 0 : index
      %c0_12 = arith.constant 0 : index
      %13 = vector.load %arg7[%c0_11, %c0_12] : memref<256x384xf32, #tpu.memory_space<vmem>>, vector<256x384xf32>
      tpu.vector_store %arg7[%c0_11, %c0_12], %12 {strides = array<i32>} : memref<256x384xf32, #tpu.memory_space<vmem>>, vector<256x384xf32>,
    } else {
    }
    %c0 = arith.constant 0 : index
    %c0_1 = arith.constant 0 : index
    %3 = vector.load %arg7[%c0, %c0_1] : memref<256x384xf32, #tpu.memory_space<vmem>>, vector<256x384xf32>
    %c0_2 = arith.constant 0 : index
    %c0_3 = arith.constant 0 : index
    %4 = vector.load %arg3[%c0_2, %c0_3] : memref<256x256xf32, #tpu.memory_space<vmem>>, vector<256x256xf32>
    %c0_4 = arith.constant 0 : index
    %c0_5 = arith.constant 0 : index
    %5 = vector.load %arg4[%c0_4, %c0_5] : memref<256x384xf32, #tpu.memory_space<vmem>>, vector<256x384xf32>
    %cst = arith.constant dense<0.000000e+00> : vector<256x384xf32>
    %6 = tpu.matmul %4, %5, %cst {dimension_numbers = #tpu.dot_dimension_numbers<[1], [0], [0], [1], [0, 0, 1, 1], [], []>} : vector<256x256xf32>, vector<256x384xf32>, vector<256x384xf32> -> vector<256x384xf32>
    %7 = arith.addf %3, %6 : vector<256x384xf32>
    %c0_6 = arith.constant 0 : index
    %c0_7 = arith.constant 0 : index
    %8 = vector.load %arg7[%c0_6, %c0_7] : memref<256x384xf32, #tpu.memory_space<vmem>>, vector<256x384xf32>
    tpu.vector_store %arg7[%c0_6, %c0_7], %7 {strides = array<i32>} : memref<256x384xf32, #tpu.memory_space<vmem>>, vector<256x384xf32>,
    %c0_i32_8 = arith.constant 0 : i32
    %9 = arith.cmpi eq, %arg2, %c0_i32_8 : i32
    %10 = arith.extui %9 : i1 to i32
    %c0_i32_9 = arith.constant 0 : i32
    %11 = arith.cmpi ne, %10, %c0_i32_9 : i32
    scf.if %11 {
      %c0_10 = arith.constant 0 : index
      %c0_11 = arith.constant 0 : index
      %12 = vector.load %arg7[%c0_10, %c0_11] : memref<256x384xf32, #tpu.memory_space<vmem>>, vector<256x384xf32>
      %c0_12 = arith.constant 0 : index
      %c0_13 = arith.constant 0 : index
      %13 = vector.load %arg5[%c0_12, %c0_13] : memref<1x384xf32, #tpu.memory_space<vmem>>, vector<1x384xf32>
      %14 = vector.broadcast %13 : vector<1x384xf32> to vector<256x384xf32>
      %15 = arith.addf %12, %14 : vector<256x384xf32>
      %c0_14 = arith.constant 0 : index
      %c0_15 = arith.constant 0 : index
      %16 = vector.load %arg6[%c0_14, %c0_15] : memref<256x384xf32, #tpu.memory_space<vmem>>, vector<256x384xf32>
      tpu.vector_store %arg6[%c0_14, %c0_15], %15 {strides = array<i32>} : memref<256x384xf32, #tpu.memory_space<vmem>>, vector<256x384xf32>,
    } else {
    }
    return
  }
  func.func @transform_0(%arg0: i32, %arg1: i32, %arg2: i32) -> (i32, i32) {
    %c0_i32 = arith.constant 0 : i32
    return %arg0, %arg2 : i32, i32
  }
  func.func @transform_1(%arg0: i32, %arg1: i32, %arg2: i32) -> (i32, i32) {
    %c0_i32 = arith.constant 0 : i32
    return %arg2, %arg1 : i32, i32
  }
  func.func @transform_2(%arg0: i32, %arg1: i32, %arg2: i32) -> (i32, i32) {
    %c0_i32 = arith.constant 0 : i32
    %c0_i32_0 = arith.constant 0 : i32
    return %c0_i32, %arg1 : i32, i32
  }
  func.func @transform_3(%arg0: i32, %arg1: i32, %arg2: i32) -> (i32, i32) {
    %c0_i32 = arith.constant 0 : i32
    return %arg0, %arg1 : i32, i32
  }
}

</mosaic_0001>

<bundles_post_ra>
// kernel: tpu_custom_call.1
= control target key start
LH: loop header
LB: loop body
LE: loop exit
PB: predicated region body
PF: predicated region fallthrough
CT: control target
= control target key end

     0   :  { %8 = vsyncpa [#allocation4], 0  ;;  %s2677_s0 = inlined_call_operand.hbm [shape: f32[256,256], index: 0, kind: input, shape index: {}]   ;;  %s2678_s1 = inlined_call_operand.hbm [shape: f32[256,768], index: 1, kind: input, shape index: {}]   ;;  %s2679_s2 = inlined_call_operand.vmem [shape: f32[1,768], index: 2, kind: input, shape index: {}]   ;;  %s2680_s3 = inlined_call_operand.hbm [shape: f32[256,768], index: 3, kind: output, shape index: {}]  }
   0x1   :  { %9 = vsyncpa [#allocation7], 0 }
   0x2   :  { %11 = vsyncpa [#allocation7 + $0x1], 0 }
   0x3   :  { %12 = vsyncpa [#allocation5], 0 }
   0x4   :  { %14 = vsyncpa [#allocation5 + $0x1], 0  ;;  %s2126_s12 = smov 0   ;;  %s2128_s13 = smov 0  }
   0x5   :  { %s2130_s14 = smov 0   ;;  %s2132_s15 = smov 0  }
   0x6   :  { %s2134_s16 = smov 0   ;;  %s2136_s17 = smov 0  }
   0x7 LB: > { %s1739_s18 = sadd.s32 4294967295, %s2092_s17   ;;  %s1740_s19 = sadd.s32 4294967294, %s2092_s17   ;;  %s2092_s17 = sphi %s2136_s17, %s20_s17   ;;  %s2088_s16 = sphi %s2134_s16, %s2709_s16   ;;  %s2084_s15 = sphi %s2132_s15, %s2708_s15   ;;  %s2080_s14 = sphi %s2130_s14, %s2707_s14   ;;  %s2076_s13 = sphi %s2128_s13, %s2706_s13   ;;  %s2072_s12 = sphi %s2126_s12, %s2705_s12  }
   0x8   : > { %p83_p0 = scmp.ne.s32.totalorder %s2080_s14, %s2076_s13  ;;  %p84_p1 = scmp.eq.s32.totalorder %s2092_s17, 0 }
   0x9   : > { %p89_p2 = scmp.ne.s32.totalorder %s2076_s13, %s2072_s12  ;;  %p2164_p3 = scmp.eq.s32.totalorder %s1739_s18, 0 }
   0xa   : > { %p141_p4 = scmp.eq.s32.totalorder %s1739_s18, 1  ;;  %p2168_p5 = por %p84_p1, %p83_p0 }
   0xb   : > { %s2687_s21 = scalar_select %p2164_p3, 1, 0 }
   0xc   : > { %p147_p6 = scmp.eq.s32.totalorder %s1740_s19, 1  ;;  %p2174_p7 = por %p2164_p3, %p89_p2 }
   0xd   : > { %p2178_p8 = por %p141_p4, %p83_p0  ;;  %p1741_p10 = scmp.ge.s32.totalorder %s2092_s17, 1 }
   0xe   : > { %s2689_s23 = scalar_select %p2174_p7, 1, 0 }
   0xf   : > { %s2690_s24 = scalar_select %p2178_p8, 1, 0 }
  0x10   : > { %p2182_p9 = por %p147_p6, %p89_p2  ;;  %p154_p11 = scmp.lt.s32.totalorder %s2092_s17, 3 }
  0x11   : > { %s2094_s27 = smov [#allocation3]   ;;  %p1887_p1 = scmp.lt.s32.totalorder %s2092_s17, 2 }
  0x12   : > { %s2691_s25 = scalar_select %p2182_p9, 1, 0 }
  0x13   : > { %p2188_p12 = pnand %p1741_p10, %p154_p11  ;;  %s172_s28 = sshll.u32 %s2094_s27, 4  ;;  %s2192_s28 = int_to_ptr.vmem [resolvable:$true] %s172_s28 }
  0x14   : > { %p2206_p4 = pnand %p1887_p1, %p2168_p5  ;;  %s35_s4 = sadd.s32 1, %s2088_s16 }
  0x15   : > { %s2692_s26 = scalar_select %p2188_p12, 1, 0 }
  0x16   : > { %p1874_p13 = pneg %p2188_p12  ;;  %p2211_p6 = scmp.ge.s32.totalorder %s35_s4, 2 }
  0x17   : > { %s2694_s30 = scalar_select %p2206_p4, 1, 0 }
  0x18   : > { %p2200_p2 = pnand %p1874_p13, %p2164_p3  ;;  %s1948_s8 = scalar_lea.hbm %s2677_s0, 8192 }
  0x19   : > { %s2695_s5 = scalar_select %p2211_p6, 1, 0 }
  0x1a   : > { %p1949_p10 = scmp.ne.s32.totalorder %s2677_s0, %s1948_s8  ;;  %p1950_p11 = pneg %p2200_p2 }
  0x1b   : > { %p1955_p1 = scmp.lt.u32.totalorder %s1948_s8, %s2677_s0 }
  0x1c   : > { %p1951_p13 = pnand %p1950_p11, %p1949_p10 }
  0x1e   : > { %p1952_p5 = pneg %p1951_p13 }
  0x20   : > { %p1957_p0 = pnand %p1955_p1, %p1952_p5 }
  0x22   : > { %1960 = shalt.err (!%p1957_p0)
}
  0x23   : > { %s1961_s19 = scalar_lea.vmem %s2192_s28, 8192  ;;  %p1969_p3 = scmp.lt.s32.totalorder %s2192_s28, %s2192_s28 }
  0x24   : > { %p1962_p9 = scmp.ne.s32.totalorder %s2192_s28, %s1961_s19  ;;  %p1970_p12 = scmp.lt.s32.totalorder %s1961_s19, %s1961_s19 }
  0x26   : > { %p1964_p8 = pnand %p1962_p9, %p1950_p11  ;;  %p1971_p4 = por %p1970_p12, %p1969_p3 }
  0x28   : > { %p1965_p7 = pneg %p1964_p8 }
  0x2a   : > { %p1972_p6 = pnand %p1971_p4, %p1965_p7 }
  0x2c   : > { %1975 = shalt.err (!%p1972_p6)
}
  0x2d   : > { %s2095_s22 = smov 256   ;;  %s2096_s27 = smov 16  }
  0x2e   : > { %1877 = dma.hbm_to_vmem [thread:$0]  (!%p2200_p2), %s2677_s0, 8192, %s2192_s28, [#allocation4], %s2095_s22, %s2095_s22, %s2096_s27  }
  0x2f   : > { %s186_s8 = sand.u32 1, %s2080_s14   ;;  %p2696_p3 = scmp.ne.s32.totalorder %s2695_s5, 0 }
  0x30   : > { %s1864_s9 = smul.u32 768, %s186_s8  ;;  %s2697_s22 = sadd.s32 1, %s2080_s14 }
  0x31   : > { %s2711_s4 = smov (%p2696_p3, %s35_s4), 0  ;;  %s1750_s11 = smul.u32 384, %s2088_s16 }
  0x32   : > { %s72_s10 = ssub.s32 %s2088_s16, %s2711_s4  ;;  %s190_s28 = scalar_lea.vmem [#allocation6], %s1864_s9 }
  0x33   : > { %p74_p7 = scmp.eq.s32.totalorder %s72_s10, 0  ;;  %s2247_s20 = scalar_lea.hbm %s2678_s1, %s1750_s11 }
  0x34   : > { %s200_s29 = sshll.u32 %s190_s28, 4  ;;  %s2256_s27 = scalar_lea.sflag [#allocation7], %s186_s8  ;;  %s2254_s29 = int_to_ptr.vmem [resolvable:$true] %s200_s29 }
  0x35   : > { %s2252_s5 = scalar_select %p74_p7, %s2080_s14, %s2697_s22  }
  0x36   : > { %s1976_s6 = scalar_lea.hbm %s2247_s20, 12288  ;;  %p2698_p9 = scmp.ne.s32.totalorder %s2694_s30, 0 }
  0x37   : > { %p1977_p8 = scmp.ne.s32.totalorder %s2247_s20, %s1976_s6  ;;  %s1981_s9 = scalar_lea.hbm %s2678_s1, 24576 }
  0x38   : > { %p1978_p12 = pneg %p2698_p9  ;;  %p1982_p4 = scmp.lt.u32.totalorder %s2247_s20, %s2678_s1 }
  0x39   : > { %p1983_p6 = scmp.lt.u32.totalorder %s1981_s9, %s1976_s6  ;;  %p1985_p11 = scmp.lt.u32.totalorder %s1976_s6, %s2247_s20 }
  0x3a   : > { %p1979_p0 = pnand %p1978_p12, %p1977_p8 }
  0x3b   : > { %p1984_p10 = por %p1983_p6, %p1982_p4 }
  0x3c   : > { %p1980_p2 = pneg %p1979_p0 }
  0x3d   : > { %p1986_p13 = por %p1985_p11, %p1984_p10 }
  0x3f   : > { %p1987_p5 = pnand %p1986_p13, %p1980_p2 }
  0x41   : > { %1990 = shalt.err (!%p1987_p5)
}
  0x42   : > { %s1991_s8 = scalar_lea.vmem %s2254_s29, 12288  ;;  %s2097_s19 = smov [#allocation6]  }
  0x43   : > { %p1992_p1 = scmp.ne.s32.totalorder %s2254_s29, %s1991_s8  ;;  %s1996_s28 = sshll.u32 %s2097_s19, 4  ;;  %s1997_s28 = int_to_ptr.vmem [resolvable:$false] %s1996_s28 }
  0x44   : > { %s1998_s22 = scalar_lea.vmem %s1997_s28, 24576  ;;  %p1999_p8 = scmp.lt.s32.totalorder %s2254_s29, %s1997_s28 }
  0x45   : > { %p1994_p3 = pnand %p1992_p1, %p1978_p12  ;;  %p2000_p0 = scmp.lt.s32.totalorder %s1998_s22, %s1991_s8 }
  0x47   : > { %p1995_p7 = pneg %p1994_p3  ;;  %p2001_p4 = por %p2000_p0, %p1999_p8 }
  0x49   : > { %p2002_p6 = pnand %p2001_p4, %p1995_p7 }
  0x4b   : > { %2005 = shalt.err (!%p2002_p6)
}
  0x4c   : > { %s2098_s6 = smov 768   ;;  %s2099_s7 = smov 384  }
  0x4d   : > { %s2100_s10 = smov 24   ;;  %p2699_p12 = scmp.ne.s32.totalorder %s2692_s26, 0 }
  0x4e   : > { %1881 = dma.hbm_to_vmem [thread:$0]  (!%p2698_p9), %s2247_s20, 12288, %s2254_s29, %s2256_s27, %s2098_s6, %s2099_s7, %s2100_s10  }
  0x4f   : > { %220 = sbr.rel (%p2699_p12) target bundleno = 514 (0x202), region = 32  ;;  %p2700_p2 = scmp.ne.s32.totalorder (!%p2699_p12), %s2687_s21, 0 }
  0x56   : > { %2059 = dma.done.wait (%p2700_p2), [#allocation4], 8192  }
  0x57   : > { %2061 = vsyncadd (%p2700_p2), [#allocation4], 4294959104  ;;  %s2291_s9 = sand.u32 1, %s2076_s13   ;;  %p2701_p9 = scmp.ne.s32.totalorder %s2689_s23, 0 }
  0x58   : > { %s1865_s11 = smul.u32 768, %s2291_s9  ;;  %s227_s18 = scalar_lea.sflag [#allocation7], %s2291_s9 }
  0x5a   : > { %s2297_s20 = scalar_lea.vmem [#allocation6], %s1865_s11 }
  0x5b   : > { %2063 = dma.done.wait (%p2701_p9), %s227_s18, 12288  }
  0x5c   : > { %2065 = vsyncadd (%p2701_p9), %s227_s18, 4294955008  ;;  %v2101_v0 = vmov 0.0|0.0   ;;  %v529_v1 = vld [vmem:[%s2297_s20 + $0x8] sm:$0xff]  ;;  %v532_v2 = vld [vmem:[%s2297_s20 + $0x20] sm:$0xff]  ;;  %s261_s21 = smul.u32 3, %s2084_s15  ;;  %s2430_s29 = scalar_lea.vmem [#allocation8], %s1865_s11 }
  0x5d   : > { %1816 = vmatprep.subr.bf16.mxu1 %v2101_v0  ;;  %v528_v3 = vld [vmem:[%s2297_s20] sm:$0xff]  ;;  %v1752_v4 = vpack.c.bf16 %v532_v2, %v529_v1  ;;  %v531_v5 = vld [vmem:[%s2297_s20 + $0x18] sm:$0xff]  ;;  %v530_v6 = vld [vmem:[%s2297_s20 + $0x10] sm:$0xff]  ;;  %s1751_s27 = smul.u32 384, %s2084_s15  ;;  %s1623_s8 = sshll.u32 %s2430_s29, 4  ;;  %s2624_s8 = int_to_ptr.vmem [resolvable:$true] %s1623_s8 }
  0x5e   : > { %v533_v7 = vld [vmem:[%s2297_s20 + $0x28] sm:$0xff]  ;;  %v1754_v8 = vpack.c.bf16 %v531_v5, %v528_v3  ;;  %v535_v10 = vld [vmem:[%s2297_s20 + $0x38] sm:$0xff]  ;;  %v538_v11 = vld [vmem:[%s2297_s20 + $0x50] sm:$0xff]  ;;  %p262_p10 = scmp.lt.s32.totalorder %s261_s21, 5  ;;  %s1607_s22 = scalar_lea.sflag [#allocation5], %s2291_s9 }
  0x5f   : > { %v1817_v9 = vpack.c.bf16 %v533_v7, %v530_v6  ;;  %v534_v12 = vld [vmem:[%s2297_s20 + $0x30] sm:$0xff]  ;;  %1753 = vmatprep.subr.bf16.mxu0 %v1752_v4  ;;  %v1756_v13 = vpack.c.bf16 %v538_v11, %v535_v10  ;;  %v537_v14 = vld [vmem:[%s2297_s20 + $0x48] sm:$0xff]  ;;  %v536_v15 = vld [vmem:[%s2297_s20 + $0x40] sm:$0xff]  ;;  %s2620_s28 = scalar_lea.hbm %s2680_s3, %s1751_s27  ;;  %s2006_s6 = scalar_lea.vmem %s2624_s8, 12288 }
  0x60   : > { %v539_v16 = vld [vmem:[%s2297_s20 + $0x58] sm:$0xff]  ;;  %1755 = vmatpush1.bf16.msra.mxu0 %v1754_v8  ;;  %v1758_v17 = vpack.c.bf16 %v537_v14, %v534_v12  ;;  %v541_v19 = vld [vmem:[%s2297_s20 + $0x68] sm:$0xff]  ;;  %v544_v20 = vld [vmem:[%s2297_s20 + $0x80] sm:$0xff]  ;;  %s2713_s21 = smov (!%p262_p10, %s261_s21), 5  ;;  %p2007_p11 = scmp.ne.s32.totalorder %s2624_s8, %s2006_s6 }
  0x61   : > { %1818 = vmatpush1.bf16.msra.mxu1 %v1817_v9  ;;  %v1820_v18 = vpack.c.bf16 %v539_v16, %v536_v15  ;;  %v540_v21 = vld [vmem:[%s2297_s20 + $0x60] sm:$0xff]  ;;  %1757 = vmatprep.subr.bf16.mxu0 %v1756_v13  ;;  %v1760_v22 = vpack.c.bf16 %v544_v20, %v541_v19  ;;  %v543_v23 = vld [vmem:[%s2297_s20 + $0x78] sm:$0xff]  ;;  %v542_v24 = vld [vmem:[%s2297_s20 + $0x70] sm:$0xff]  ;;  %s264_s30 = scalar_lea.vmem %s2679_s2, %s2713_s21  ;;  %p2702_p13 = scmp.ne.s32.totalorder %s2690_s24, 0 }
  0x62   : > { %1819 = vmatprep.subr.bf16.mxu1 %v2101_v0  ;;  %v545_v25 = vld [vmem:[%s2297_s20 + $0x88] sm:$0xff]  ;;  %v547_v26 = vld [vmem:[%s2297_s20 + $0x98] sm:$0xff]  ;;  %v550_v27 = vld [vmem:[%s2297_s20 + $0xb0] sm:$0xff]  ;;  %v1762_v28 = vpack.c.bf16 %v543_v23, %v540_v21  ;;  %s2102_s7 = smov [#allocation8]  }
  0x63   : > { %v1823_v29 = vpack.c.bf16 %v545_v25, %v542_v24  ;;  %v546_v30 = vld [vmem:[%s2297_s20 + $0x90] sm:$0xff]  ;;  %v1764_v31 = vpack.c.bf16 %v550_v27, %v547_v26  ;;  %v549_v32 = vld [vmem:[%s2297_s20 + $0xa8] sm:$0xff]  ;;  %v548_v33 = vld [vmem:[%s2297_s20 + $0xa0] sm:$0xff]  ;;  %p2008_p5 = pnand %p2007_p11, %p2702_p13  ;;  %s2010_s10 = sshll.u32 %s2102_s7, 4  ;;  %s2011_s10 = int_to_ptr.vmem [resolvable:$false] %s2010_s10 }
  0x64   : > { %1759 = vmatpush1.bf16.msra.mxu0 %v1758_v17  ;;  %v551_v34 = vld [vmem:[%s2297_s20 + $0xb8] sm:$0xff]  ;;  %v553_v35 = vld [vmem:[%s2297_s20 + $0xc8] sm:$0xff]  ;;  %v556_v36 = vld [vmem:[%s2297_s20 + $0xe0] sm:$0xff]  ;;  %v1766_v37 = vpack.c.bf16 %v549_v32, %v546_v30  ;;  %s2012_s11 = scalar_lea.vmem %s2011_s10, 24576  ;;  %p2013_p3 = scmp.lt.s32.totalorder %s2624_s8, %s2011_s10 }
  0x65   : > { %1821 = vmatpush1.bf16.msra.mxu1 %v1820_v18  ;;  %1761 = vmatprep.subr.bf16.mxu0 %v1760_v22  ;;  %v1826_v38 = vpack.c.bf16 %v551_v34, %v548_v33  ;;  %v552_v39 = vld [vmem:[%s2297_s20 + $0xc0] sm:$0xff]  ;;  %v1768_v40 = vpack.c.bf16 %v556_v36, %v553_v35  ;;  %v555_v41 = vld [vmem:[%s2297_s20 + $0xd8] sm:$0xff]  ;;  %v554_v42 = vld [vmem:[%s2297_s20 + $0xd0] sm:$0xff]  ;;  %p2009_p1 = pneg %p2008_p5  ;;  %p2014_p7 = scmp.lt.s32.totalorder %s2012_s11, %s2006_s6 }
  0x66   : > { %1822 = vmatprep.subr.bf16.mxu1 %v2101_v0  ;;  %v557_v43 = vld [vmem:[%s2297_s20 + $0xe8] sm:$0xff]  ;;  %v559_v44 = vld [vmem:[%s2297_s20 + $0xf8] sm:$0xff]  ;;  %v562_v45 = vld [vmem:[%s2297_s20 + $0x110] sm:$0xff]  ;;  %v1770_v46 = vpack.c.bf16 %v555_v41, %v552_v39 }
  0x67   : > { %v1829_v47 = vpack.c.bf16 %v557_v43, %v554_v42  ;;  %v558_v48 = vld [vmem:[%s2297_s20 + $0xf0] sm:$0xff]  ;;  %v1772_v49 = vpack.c.bf16 %v562_v45, %v559_v44  ;;  %v561_v50 = vld [vmem:[%s2297_s20 + $0x108] sm:$0xff]  ;;  %v560_v51 = vld [vmem:[%s2297_s20 + $0x100] sm:$0xff]  ;;  %p2015_p8 = por %p2014_p7, %p2013_p3 }
  0x68   : > { %1763 = vmatpush1.bf16.msra.mxu0 %v1762_v28  ;;  %v563_v52 = vld [vmem:[%s2297_s20 + $0x118] sm:$0xff]  ;;  %v565_v53 = vld [vmem:[%s2297_s20 + $0x128] sm:$0xff]  ;;  %v568_v54 = vld [vmem:[%s2297_s20 + $0x140] sm:$0xff]  ;;  %v1774_v55 = vpack.c.bf16 %v561_v50, %v558_v48 }
  0x69   : > { %1824 = vmatpush1.bf16.msra.mxu1 %v1823_v29  ;;  %1765 = vmatprep.subr.bf16.mxu0 %v1764_v31  ;;  %v1832_v56 = vpack.c.bf16 %v563_v52, %v560_v51  ;;  %v564_v57 = vld [vmem:[%s2297_s20 + $0x120] sm:$0xff]  ;;  %v1776_v58 = vpack.c.bf16 %v568_v54, %v565_v53  ;;  %v567_v59 = vld [vmem:[%s2297_s20 + $0x138] sm:$0xff]  ;;  %v566_v60 = vld [vmem:[%s2297_s20 + $0x130] sm:$0xff]  ;;  %p2016_p0 = pnand %p2015_p8, %p2009_p1 }
  0x6a   : > { %1825 = vmatprep.subr.bf16.mxu1 %v2101_v0  ;;  %v569_v61 = vld [vmem:[%s2297_s20 + $0x148] sm:$0xff]  ;;  %v571_v62 = vld [vmem:[%s2297_s20 + $0x158] sm:$0xff]  ;;  %v574_v63 = vld [vmem:[%s2297_s20 + $0x170] sm:$0xff]  ;;  %v1778_v1 = vpack.c.bf16 %v567_v59, %v564_v57 }
  0x6b   : > { %v1835_v2 = vpack.c.bf16 %v569_v61, %v566_v60  ;;  %v570_v3 = vld [vmem:[%s2297_s20 + $0x150] sm:$0xff]  ;;  %v1780_v4 = vpack.c.bf16 %v574_v63, %v571_v62  ;;  %v573_v5 = vld [vmem:[%s2297_s20 + $0x168] sm:$0xff]  ;;  %v572_v6 = vld [vmem:[%s2297_s20 + $0x160] sm:$0xff] }
  0x6c   : > { %1767 = vmatpush1.bf16.msra.mxu0 %v1766_v37  ;;  %v575_v7 = vld [vmem:[%s2297_s20 + $0x178] sm:$0xff]  ;;  %v577_v8 = vld [vmem:[%s2297_s20 + $0x188] sm:$0xff]  ;;  %v580_v9 = vld [vmem:[%s2297_s20 + $0x1a0] sm:$0xff]  ;;  %v1782_v10 = vpack.c.bf16 %v573_v5, %v570_v3 }
  0x6d   : > { %1827 = vmatpush1.bf16.msra.mxu1 %v1826_v38  ;;  %1769 = vmatprep.subr.bf16.mxu0 %v1768_v40  ;;  %v1838_v11 = vpack.c.bf16 %v575_v7, %v572_v6  ;;  %v576_v12 = vld [vmem:[%s2297_s20 + $0x180] sm:$0xff]  ;;  %v1784_v13 = vpack.c.bf16 %v580_v9, %v577_v8  ;;  %v579_v14 = vld [vmem:[%s2297_s20 + $0x198] sm:$0xff]  ;;  %v578_v15 = vld [vmem:[%s2297_s20 + $0x190] sm:$0xff] }
  0x6e   : > { %1828 = vmatprep.subr.bf16.mxu1 %v2101_v0  ;;  %v581_v16 = vld [vmem:[%s2297_s20 + $0x1a8] sm:$0xff]  ;;  %v583_v17 = vld [vmem:[%s2297_s20 + $0x1b8] sm:$0xff]  ;;  %v586_v18 = vld [vmem:[%s2297_s20 + $0x1d0] sm:$0xff]  ;;  %v1786_v19 = vpack.c.bf16 %v579_v14, %v576_v12 }
  0x6f   : > { %v1841_v20 = vpack.c.bf16 %v581_v16, %v578_v15  ;;  %v582_v21 = vld [vmem:[%s2297_s20 + $0x1b0] sm:$0xff]  ;;  %v465_v22 = vld [vmem:[#allocation3 + $0x8] sm:$0xff]  ;;  %v1788_v23 = vpack.c.bf16 %v586_v18, %v583_v17  ;;  %v584_v25 = vld [vmem:[%s2297_s20 + $0x1c0] sm:$0xff] }
  0x70   : > { %1771 = vmatpush1.bf16.msra.mxu0 %v1770_v46  ;;  %v585_v24 = vld [vmem:[%s2297_s20 + $0x1c8] sm:$0xff]  ;;  %v587_v26 = vld [vmem:[%s2297_s20 + $0x1d8] sm:$0xff]  ;;  %v592_v28 = vld [vmem:[%s2297_s20 + $0x200] sm:$0xff]  ;;  %688 = vmatprep.mubr.f32.mxu0 %v465_v22 }
  0x71   : > { %1830 = vmatpush1.bf16.msra.mxu1 %v1829_v47  ;;  %1773 = vmatprep.subr.bf16.mxu0 %v1772_v49  ;;  %v589_v27 = vld [vmem:[%s2297_s20 + $0x1e8] sm:$0xff]  ;;  %v1790_v29 = vpack.c.bf16 %v585_v24, %v582_v21  ;;  %v1844_v30 = vpack.c.bf16 %v587_v26, %v584_v25  ;;  %v588_v31 = vld [vmem:[%s2297_s20 + $0x1e0] sm:$0xff]  ;;  %v591_v33 = vld [vmem:[%s2297_s20 + $0x1f8] sm:$0xff] }
  0x72   : > { %1831 = vmatprep.subr.bf16.mxu1 %v2101_v0  ;;  %945 = vmatprep.mubr.f32.mxu1 %v465_v22  ;;  %v1792_v32 = vpack.c.bf16 %v592_v28, %v589_v27  ;;  %v590_v34 = vld [vmem:[%s2297_s20 + $0x1f0] sm:$0xff]  ;;  %v593_v35 = vld [vmem:[%s2297_s20 + $0x208] sm:$0xff]  ;;  %v595_v36 = vld [vmem:[%s2297_s20 + $0x218] sm:$0xff]  ;;  %v1794_v38 = vpack.c.bf16 %v591_v33, %v588_v31 }
  0x73   : > { %v598_v37 = vld [vmem:[%s2297_s20 + $0x230] sm:$0xff]  ;;  %v1847_v39 = vpack.c.bf16 %v593_v35, %v590_v34  ;;  %v597_v42 = vld [vmem:[%s2297_s20 + $0x228] sm:$0xff]  ;;  %v596_v43 = vld [vmem:[%s2297_s20 + $0x220] sm:$0xff] }
  0x74   : > { %1775 = vmatpush1.bf16.msra.mxu0 %v1774_v55  ;;  %v594_v40 = vld [vmem:[%s2297_s20 + $0x210] sm:$0xff]  ;;  %v1796_v41 = vpack.c.bf16 %v598_v37, %v595_v36  ;;  %v599_v44 = vld [vmem:[%s2297_s20 + $0x238] sm:$0xff]  ;;  %v601_v45 = vld [vmem:[%s2297_s20 + $0x248] sm:$0xff] }
  0x75   : > { %1833 = vmatpush1.bf16.msra.mxu1 %v1832_v56  ;;  %1777 = vmatprep.subr.bf16.mxu0 %v1776_v58  ;;  %v604_v46 = vld [vmem:[%s2297_s20 + $0x260] sm:$0xff]  ;;  %v1798_v47 = vpack.c.bf16 %v597_v42, %v594_v40  ;;  %v1850_v48 = vpack.c.bf16 %v599_v44, %v596_v43  ;;  %v603_v51 = vld [vmem:[%s2297_s20 + $0x258] sm:$0xff]  ;;  %v602_v52 = vld [vmem:[%s2297_s20 + $0x250] sm:$0xff] }
  0x76   : > { %1834 = vmatprep.subr.bf16.mxu1 %v2101_v0  ;;  %v600_v49 = vld [vmem:[%s2297_s20 + $0x240] sm:$0xff]  ;;  %v1800_v50 = vpack.c.bf16 %v604_v46, %v601_v45  ;;  %v605_v53 = vld [vmem:[%s2297_s20 + $0x268] sm:$0xff]  ;;  %v607_v54 = vld [vmem:[%s2297_s20 + $0x278] sm:$0xff] }
  0x77   : > { %v610_v55 = vld [vmem:[%s2297_s20 + $0x290] sm:$0xff]  ;;  %v1802_v56 = vpack.c.bf16 %v603_v51, %v600_v49  ;;  %v1853_v57 = vpack.c.bf16 %v605_v53, %v602_v52  ;;  %v609_v60 = vld [vmem:[%s2297_s20 + $0x288] sm:$0xff]  ;;  %v608_v61 = vld [vmem:[%s2297_s20 + $0x280] sm:$0xff] }
  0x78   : > { %1779 = vmatpush1.bf16.msra.mxu0 %v1778_v1  ;;  %v606_v58 = vld [vmem:[%s2297_s20 + $0x270] sm:$0xff]  ;;  %v1804_v59 = vpack.c.bf16 %v610_v55, %v607_v54  ;;  %v611_v62 = vld [vmem:[%s2297_s20 + $0x298] sm:$0xff]  ;;  %v613_v63 = vld [vmem:[%s2297_s20 + $0x2a8] sm:$0xff] }
  0x79   : > { %1836 = vmatpush1.bf16.msra.mxu1 %v1835_v2  ;;  %1781 = vmatprep.subr.bf16.mxu0 %v1780_v4  ;;  %v616_v1 = vld [vmem:[%s2297_s20 + $0x2c0] sm:$0xff]  ;;  %v1806_v2 = vpack.c.bf16 %v609_v60, %v606_v58  ;;  %v1856_v3 = vpack.c.bf16 %v611_v62, %v608_v61  ;;  %v615_v6 = vld [vmem:[%s2297_s20 + $0x2b8] sm:$0xff]  ;;  %v614_v7 = vld [vmem:[%s2297_s20 + $0x2b0] sm:$0xff] }
  0x7a   : > { %1837 = vmatprep.subr.bf16.mxu1 %v2101_v0  ;;  %v612_v4 = vld [vmem:[%s2297_s20 + $0x2a0] sm:$0xff]  ;;  %v1808_v5 = vpack.c.bf16 %v616_v1, %v613_v63  ;;  %v617_v8 = vld [vmem:[%s2297_s20 + $0x2c8] sm:$0xff]  ;;  %v619_v9 = vld [vmem:[%s2297_s20 + $0x2d8] sm:$0xff] }
  0x7b   : > { %v1859_v12 = vpack.c.bf16 %v617_v8, %v614_v7  ;;  %v621_v15 = vld [vmem:[%s2297_s20 + $0x2e8] sm:$0xff]  ;;  %v620_v16 = vld [vmem:[%s2297_s20 + $0x2e0] sm:$0xff]  ;;  %v623_v17 = vld [vmem:[%s2297_s20 + $0x2f8] sm:$0xff] }
  0x7c   : > { %1783 = vmatpush1.bf16.msra.mxu0 %v1782_v10  ;;  %v622_v10 = vld [vmem:[%s2297_s20 + $0x2f0] sm:$0xff]  ;;  %v467_v21 = vld [vmem:[#allocation3 + $0x18] sm:$0xff]  ;;  %v468_v24 = vld [vmem:[#allocation3 + $0x20] sm:$0xff] }
  0x7d   : > { %1839 = vmatpush1.bf16.msra.mxu1 %v1838_v11  ;;  %1785 = vmatprep.subr.bf16.mxu0 %v1784_v13  ;;  %v1810_v11 = vpack.c.bf16 %v615_v6, %v612_v4  ;;  %v618_v13 = vld [vmem:[%s2297_s20 + $0x2d0] sm:$0xff]  ;;  %v1812_v14 = vpack.c.bf16 %v622_v10, %v619_v9  ;;  %v471_v25 = vld [vmem:[#allocation3 + $0x38] sm:$0xff]  ;;  %v473_v26 = vld [vmem:[#allocation3 + $0x48] sm:$0xff] }
  0x7e   : > { %1840 = vmatprep.subr.bf16.mxu1 %v2101_v0  ;;  %v1814_v18 = vpack.c.bf16 %v621_v15, %v618_v13  ;;  %v466_v22 = vld [vmem:[#allocation3 + $0x10] sm:$0xff]  ;;  %v472_v27 = vld [vmem:[#allocation3 + $0x40] sm:$0xff]  ;;  %v475_v28 = vld [vmem:[#allocation3 + $0x58] sm:$0xff] }
  0x7f   : > { %v476_v31 = vld [vmem:[#allocation3 + $0x60] sm:$0xff]  ;;  %v478_v33 = vld [vmem:[#allocation3 + $0x70] sm:$0xff]  ;;  %v481_v34 = vld [vmem:[#allocation3 + $0x88] sm:$0xff] }
  0x80   : > { %1787 = vmatpush1.bf16.msra.mxu0 %v1786_v19  ;;  %v1862_v19 = vpack.c.bf16 %v623_v17, %v620_v16  ;;  %v480_v35 = vld [vmem:[#allocation3 + $0x80] sm:$0xff]  ;;  %v483_v36 = vld [vmem:[#allocation3 + $0x98] sm:$0xff]  ;;  %v482_v37 = vld [vmem:[#allocation3 + $0x90] sm:$0xff] }
  0x81   : > { %1842 = vmatpush1.bf16.msra.mxu1 %v1841_v20  ;;  %1789 = vmatprep.subr.bf16.mxu0 %v1788_v23  ;;  %v464_v20 = vld [vmem:[#allocation3] sm:$0xff]  ;;  %v469_v23 = vld [vmem:[#allocation3 + $0x28] sm:$0xff]  ;;  %v487_v40 = vld [vmem:[#allocation3 + $0xb8] sm:$0xff] }
  0x82   : > { %1843 = vmatprep.subr.bf16.mxu1 %v2101_v0  ;;  %v489_v42 = vld [vmem:[#allocation3 + $0xc8] sm:$0xff]  ;;  %v488_v43 = vld [vmem:[#allocation3 + $0xc0] sm:$0xff]  ;;  %v491_v44 = vld [vmem:[#allocation3 + $0xd8] sm:$0xff] }
  0x83   : > { %v490_v45 = vld [vmem:[#allocation3 + $0xd0] sm:$0xff]  ;;  %v493_v46 = vld [vmem:[#allocation3 + $0xe8] sm:$0xff]  ;;  %v496_v51 = vld [vmem:[#allocation3 + $0x100] sm:$0xff] }
  0x84   : > { %1791 = vmatpush1.bf16.msra.mxu0 %v1790_v29  ;;  %v474_v29 = vld [vmem:[#allocation3 + $0x50] sm:$0xff]  ;;  %v499_v52 = vld [vmem:[#allocation3 + $0x118] sm:$0xff]  ;;  %v501_v54 = vld [vmem:[#allocation3 + $0x128] sm:$0xff] }
  0x85   : > { %1845 = vmatpush1.bf16.msra.mxu1 %v1844_v30  ;;  %1793 = vmatprep.subr.bf16.mxu0 %v1792_v32  ;;  %v477_v30 = vld [vmem:[#allocation3 + $0x68] sm:$0xff]  ;;  %v479_v32 = vld [vmem:[#allocation3 + $0x78] sm:$0xff]  ;;  %v494_v49 = vld [vmem:[#allocation3 + $0xf0] sm:$0xff] }
  0x86   : > { %1846 = vmatprep.subr.bf16.mxu1 %v2101_v0  ;;  %v498_v53 = vld [vmem:[#allocation3 + $0x110] sm:$0xff]  ;;  %v500_v55 = vld [vmem:[#allocation3 + $0x120] sm:$0xff]  ;;  %v505_v58 = vld [vmem:[#allocation3 + $0x148] sm:$0xff] }
  0x87   : > { %v507_v60 = vld [vmem:[#allocation3 + $0x158] sm:$0xff]  ;;  %v506_v61 = vld [vmem:[#allocation3 + $0x150] sm:$0xff]  ;;  %v509_v62 = vld [vmem:[#allocation3 + $0x168] sm:$0xff] }
  0x88   : > { %1795 = vmatpush1.bf16.msra.mxu0 %v1794_v38  ;;  %v485_v38 = vld [vmem:[#allocation3 + $0xa8] sm:$0xff]  ;;  %v508_v63 = vld [vmem:[#allocation3 + $0x160] sm:$0xff]  ;;  %v511_v1 = vld [vmem:[#allocation3 + $0x178] sm:$0xff] }
  0x89   : > { %1848 = vmatpush1.bf16.msra.mxu1 %v1847_v39  ;;  %1797 = vmatprep.subr.bf16.mxu0 %v1796_v41  ;;  %v484_v39 = vld [vmem:[#allocation3 + $0xa0] sm:$0xff]  ;;  %v486_v41 = vld [vmem:[#allocation3 + $0xb0] sm:$0xff]  ;;  %v517_v7 = vld [vmem:[#allocation3 + $0x1a8] sm:$0xff] }
  0x8a   : > { %1849 = vmatprep.subr.bf16.mxu1 %v2101_v0  ;;  %v512_v4 = vld [vmem:[#allocation3 + $0x180] sm:$0xff]  ;;  %v514_v6 = vld [vmem:[#allocation3 + $0x190] sm:$0xff]  ;;  %v519_v9 = vld [vmem:[#allocation3 + $0x1b8] sm:$0xff] }
  0x8b   : > { %v516_v8 = vld [vmem:[#allocation3 + $0x1a0] sm:$0xff]  ;;  %v518_v10 = vld [vmem:[#allocation3 + $0x1b0] sm:$0xff]  ;;  %v523_v13 = vld [vmem:[#allocation3 + $0x1d8] sm:$0xff] }
  0x8c   : > { %1799 = vmatpush1.bf16.msra.mxu0 %v1798_v47  ;;  %v492_v47 = vld [vmem:[#allocation3 + $0xe0] sm:$0xff]  ;;  %v525_v15 = vld [vmem:[#allocation3 + $0x1e8] sm:$0xff]  ;;  %v527_v17 = vld [vmem:[#allocation3 + $0x1f8] sm:$0xff] }
  0x8d   : > { %1851 = vmatpush1.bf16.msra.mxu1 %v1850_v48  ;;  %1801 = vmatprep.subr.bf16.mxu0 %v1800_v50  ;;  %v495_v48 = vld [vmem:[#allocation3 + $0xf8] sm:$0xff]  ;;  %v497_v50 = vld [vmem:[#allocation3 + $0x108] sm:$0xff]  ;;  %v524_v16 = vld [vmem:[#allocation3 + $0x1e0] sm:$0xff] }
  0x8e   : > { %1852 = vmatprep.subr.bf16.mxu1 %v2101_v0 }
  0x90   : > { %1803 = vmatpush1.bf16.msra.mxu0 %v1802_v56  ;;  %v503_v56 = vld [vmem:[#allocation3 + $0x138] sm:$0xff] }
  0x91   : > { %1854 = vmatpush1.bf16.msra.mxu1 %v1853_v57  ;;  %1805 = vmatprep.subr.bf16.mxu0 %v1804_v59  ;;  %v502_v57 = vld [vmem:[#allocation3 + $0x130] sm:$0xff]  ;;  %v504_v59 = vld [vmem:[#allocation3 + $0x140] sm:$0xff] }
  0x92   : > { %1855 = vmatprep.subr.bf16.mxu1 %v2101_v0 }
  0x94   : > { %1807 = vmatpush1.bf16.msra.mxu0 %v1806_v2  ;;  %v510_v2 = vld [vmem:[#allocation3 + $0x170] sm:$0xff] }
  0x95   : > { %1857 = vmatpush1.bf16.msra.mxu1 %v1856_v3  ;;  %1809 = vmatprep.subr.bf16.mxu0 %v1808_v5  ;;  %v513_v3 = vld [vmem:[#allocation3 + $0x188] sm:$0xff]  ;;  %v515_v5 = vld [vmem:[#allocation3 + $0x198] sm:$0xff] }
  0x96   : > { %1858 = vmatprep.subr.bf16.mxu1 %v2101_v0 }
  0x98   : > { %1811 = vmatpush1.bf16.msra.mxu0 %v1810_v11  ;;  %v521_v11 = vld [vmem:[#allocation3 + $0x1c8] sm:$0xff] }
  0x99   : > { %1860 = vmatpush1.bf16.msra.mxu1 %v1859_v12  ;;  %1813 = vmatprep.subr.bf16.mxu0 %v1812_v14  ;;  %v520_v12 = vld [vmem:[#allocation3 + $0x1c0] sm:$0xff]  ;;  %v522_v14 = vld [vmem:[#allocation3 + $0x1d0] sm:$0xff] }
  0x9a   : > { %1861 = vmatprep.subr.bf16.mxu1 %v2101_v0  ;;  %v470_v0 = vld [vmem:[#allocation3 + $0x30] sm:$0xff] }
  0x9c   : > { %1815 = vmatpush1.bf16.msra.mxu0 %v1814_v18  ;;  %v526_v18 = vld [vmem:[#allocation3 + $0x1f0] sm:$0xff] }
  0x9d   : > { %1863 = vmatpush1.bf16.msra.mxu1 %v1862_v19  ;;  %v1399_v19 = vlaneseq }
  0x9f   : > { %689 = vmatmul.mubr.f32.vlgmr.msra.gmra.mrb[0].mxu0 %v464_v20 }
  0xa0   : > { %946 = vmatmul.mubr.f32.vlgmr.msra.gmra.mrb[0].mxu1 %v464_v20  ;;  %694 = vmatprep.mubr.f32.mxu0 %v467_v21  ;;  %v1400_v20 = vshrl.u32 %v1399_v19, 7 }
  0xa1   : > { %950 = vmatprep.mubr.f32.mxu1 %v467_v21 }
  0xa2   : > { %v1401_v21 = vsub.s32 0, %v1400_v20 }
  0xa3   : > { %695 = vmatmul.mubr.f32.gmra.mrb[2].mxu0 %v466_v22 }
  0xa4   : > { %951 = vmatmul.mubr.f32.gmra.mrb[2].mxu1 %v466_v22  ;;  %700 = vmatprep.mubr.f32.mxu0 %v469_v23  ;;  %v1409_v22 = vsub.s32 2, %v1400_v20 }
  0xa5   : > { %955 = vmatprep.mubr.f32.mxu1 %v469_v23  ;;  %v1397_v23 = vld [vmem:[%s264_s30] sm:$0x7] }
  0xa7   : > { %701 = vmatmul.mubr.f32.gmra.mrb[4].mxu0 %v468_v24 }
  0xa8   : > { %956 = vmatmul.mubr.f32.gmra.mrb[4].mxu1 %v468_v24  ;;  %706 = vmatprep.mubr.f32.mxu0 %v471_v25  ;;  %v1405_v24 = vsub.s32 1, %v1400_v20 }
  0xa9   : > { %960 = vmatprep.mubr.f32.mxu1 %v471_v25  ;;  %v2419_v25 = vrot.slane %v1397_v23, %v1401_v21 }
  0xab   : > { %707 = vmatmul.mubr.f32.gmra.mrb[6].mxu0 %v470_v0 }
  0xac   : > { %961 = vmatmul.mubr.f32.gmra.mrb[6].mxu1 %v470_v0  ;;  %712 = vmatprep.mubr.f32.mxu0 %v473_v26  ;;  %v2421_v0 = vrot.slane %v1397_v23, %v1409_v22 }
  0xad   : > { %965 = vmatprep.mubr.f32.mxu1 %v473_v26  ;;  %v2423_v26 = vrot.slane %v1397_v23, %v1405_v24 }
  0xaf   : > { %713 = vmatmul.mubr.f32.gmra.mrb[8].mxu0 %v472_v27 }
  0xb0   : > { %966 = vmatmul.mubr.f32.gmra.mrb[8].mxu1 %v472_v27  ;;  %718 = vmatprep.mubr.f32.mxu0 %v475_v28 }
  0xb1   : > { %970 = vmatprep.mubr.f32.mxu1 %v475_v28 }
  0xb3   : > { %719 = vmatmul.mubr.f32.gmra.mrb[10].mxu0 %v474_v29 }
  0xb4   : > { %971 = vmatmul.mubr.f32.gmra.mrb[10].mxu1 %v474_v29  ;;  %724 = vmatprep.mubr.f32.mxu0 %v477_v30 }
  0xb5   : > { %975 = vmatprep.mubr.f32.mxu1 %v477_v30 }
  0xb7   : > { %725 = vmatmul.mubr.f32.gmra.mrb[12].mxu0 %v476_v31 }
  0xb8   : > { %976 = vmatmul.mubr.f32.gmra.mrb[12].mxu1 %v476_v31  ;;  %730 = vmatprep.mubr.f32.mxu0 %v479_v32 }
  0xb9   : > { %980 = vmatprep.mubr.f32.mxu1 %v479_v32 }
  0xbb   : > { %731 = vmatmul.mubr.f32.gmra.mrb[14].mxu0 %v478_v33 }
  0xbc   : > { %981 = vmatmul.mubr.f32.gmra.mrb[14].mxu1 %v478_v33  ;;  %736 = vmatprep.mubr.f32.mxu0 %v481_v34 }
  0xbd   : > { %985 = vmatprep.mubr.f32.mxu1 %v481_v34 }
  0xbf   : > { %737 = vmatmul.mubr.f32.gmra.mrb[16].mxu0 %v480_v35 }
  0xc0   : > { %986 = vmatmul.mubr.f32.gmra.mrb[16].mxu1 %v480_v35  ;;  %742 = vmatprep.mubr.f32.mxu0 %v483_v36 }
  0xc1   : > { %990 = vmatprep.mubr.f32.mxu1 %v483_v36 }
  0xc3   : > { %743 = vmatmul.mubr.f32.gmra.mrb[18].mxu0 %v482_v37 }
  0xc4   : > { %991 = vmatmul.mubr.f32.gmra.mrb[18].mxu1 %v482_v37  ;;  %748 = vmatprep.mubr.f32.mxu0 %v485_v38 }
  0xc5   : > { %995 = vmatprep.mubr.f32.mxu1 %v485_v38 }
  0xc7   : > { %749 = vmatmul.mubr.f32.gmra.mrb[20].mxu0 %v484_v39 }
  0xc8   : > { %996 = vmatmul.mubr.f32.gmra.mrb[20].mxu1 %v484_v39  ;;  %754 = vmatprep.mubr.f32.mxu0 %v487_v40 }
  0xc9   : > { %1000 = vmatprep.mubr.f32.mxu1 %v487_v40 }
  0xcb   : > { %755 = vmatmul.mubr.f32.gmra.mrb[22].mxu0 %v486_v41 }
  0xcc   : > { %1001 = vmatmul.mubr.f32.gmra.mrb[22].mxu1 %v486_v41  ;;  %760 = vmatprep.mubr.f32.mxu0 %v489_v42 }
  0xcd   : > { %1005 = vmatprep.mubr.f32.mxu1 %v489_v42 }
  0xcf   : > { %761 = vmatmul.mubr.f32.gmra.mrb[24].mxu0 %v488_v43 }
  0xd0   : > { %1006 = vmatmul.mubr.f32.gmra.mrb[24].mxu1 %v488_v43  ;;  %766 = vmatprep.mubr.f32.mxu0 %v491_v44 }
  0xd1   : > { %1010 = vmatprep.mubr.f32.mxu1 %v491_v44 }
  0xd3   : > { %767 = vmatmul.mubr.f32.gmra.mrb[26].mxu0 %v490_v45 }
  0xd4   : > { %1011 = vmatmul.mubr.f32.gmra.mrb[26].mxu1 %v490_v45  ;;  %772 = vmatprep.mubr.f32.mxu0 %v493_v46 }
  0xd5   : > { %1015 = vmatprep.mubr.f32.mxu1 %v493_v46 }
  0xd7   : > { %773 = vmatmul.mubr.f32.gmra.mrb[28].mxu0 %v492_v47 }
  0xd8   : > { %1016 = vmatmul.mubr.f32.gmra.mrb[28].mxu1 %v492_v47  ;;  %778 = vmatprep.mubr.f32.mxu0 %v495_v48 }
  0xd9   : > { %1020 = vmatprep.mubr.f32.mxu1 %v495_v48 }
  0xdb   : > { %779 = vmatmul.mubr.f32.gmra.mrb[30].mxu0 %v494_v49 }
  0xdc   : > { %1021 = vmatmul.mubr.f32.gmra.mrb[30].mxu1 %v494_v49  ;;  %784 = vmatprep.mubr.f32.mxu0 %v497_v50 }
  0xdd   : > { %1025 = vmatprep.mubr.f32.mxu1 %v497_v50 }
  0xdf   : > { %785 = vmatmul.mubr.f32.gmra.mrb[32].mxu0 %v496_v51 }
  0xe0   : > { %1026 = vmatmul.mubr.f32.gmra.mrb[32].mxu1 %v496_v51  ;;  %790 = vmatprep.mubr.f32.mxu0 %v499_v52 }
  0xe1   : > { %1030 = vmatprep.mubr.f32.mxu1 %v499_v52 }
  0xe3   : > { %791 = vmatmul.mubr.f32.gmra.mrb[34].mxu0 %v498_v53 }
  0xe4   : > { %1031 = vmatmul.mubr.f32.gmra.mrb[34].mxu1 %v498_v53  ;;  %796 = vmatprep.mubr.f32.mxu0 %v501_v54 }
  0xe5   : > { %1035 = vmatprep.mubr.f32.mxu1 %v501_v54 }
  0xe7   : > { %797 = vmatmul.mubr.f32.gmra.mrb[36].mxu0 %v500_v55 }
  0xe8   : > { %1036 = vmatmul.mubr.f32.gmra.mrb[36].mxu1 %v500_v55  ;;  %802 = vmatprep.mubr.f32.mxu0 %v503_v56 }
  0xe9   : > { %1040 = vmatprep.mubr.f32.mxu1 %v503_v56 }
  0xeb   : > { %803 = vmatmul.mubr.f32.gmra.mrb[38].mxu0 %v502_v57 }
  0xec   : > { %1041 = vmatmul.mubr.f32.gmra.mrb[38].mxu1 %v502_v57  ;;  %808 = vmatprep.mubr.f32.mxu0 %v505_v58 }
  0xed   : > { %1045 = vmatprep.mubr.f32.mxu1 %v505_v58 }
  0xef   : > { %809 = vmatmul.mubr.f32.gmra.mrb[40].mxu0 %v504_v59 }
  0xf0   : > { %1046 = vmatmul.mubr.f32.gmra.mrb[40].mxu1 %v504_v59  ;;  %814 = vmatprep.mubr.f32.mxu0 %v507_v60 }
  0xf1   : > { %1050 = vmatprep.mubr.f32.mxu1 %v507_v60 }
  0xf3   : > { %815 = vmatmul.mubr.f32.gmra.mrb[42].mxu0 %v506_v61 }
  0xf4   : > { %1051 = vmatmul.mubr.f32.gmra.mrb[42].mxu1 %v506_v61  ;;  %820 = vmatprep.mubr.f32.mxu0 %v509_v62 }
  0xf5   : > { %1055 = vmatprep.mubr.f32.mxu1 %v509_v62 }
  0xf7   : > { %821 = vmatmul.mubr.f32.gmra.mrb[44].mxu0 %v508_v63 }
  0xf8   : > { %1056 = vmatmul.mubr.f32.gmra.mrb[44].mxu1 %v508_v63  ;;  %826 = vmatprep.mubr.f32.mxu0 %v511_v1 }
  0xf9   : > { %1060 = vmatprep.mubr.f32.mxu1 %v511_v1 }
  0xfb   : > { %827 = vmatmul.mubr.f32.gmra.mrb[46].mxu0 %v510_v2 }
  0xfc   : > { %1061 = vmatmul.mubr.f32.gmra.mrb[46].mxu1 %v510_v2  ;;  %832 = vmatprep.mubr.f32.mxu0 %v513_v3 }
  0xfd   : > { %1065 = vmatprep.mubr.f32.mxu1 %v513_v3 }
  0xff   : > { %833 = vmatmul.mubr.f32.gmra.mrb[48].mxu0 %v512_v4 }
 0x100   : > { %1066 = vmatmul.mubr.f32.gmra.mrb[48].mxu1 %v512_v4  ;;  %838 = vmatprep.mubr.f32.mxu0 %v515_v5 }
 0x101   : > { %1070 = vmatprep.mubr.f32.mxu1 %v515_v5 }
 0x103   : > { %839 = vmatmul.mubr.f32.gmra.mrb[50].mxu0 %v514_v6 }
 0x104   : > { %1071 = vmatmul.mubr.f32.gmra.mrb[50].mxu1 %v514_v6  ;;  %844 = vmatprep.mubr.f32.mxu0 %v517_v7 }
 0x105   : > { %1075 = vmatprep.mubr.f32.mxu1 %v517_v7 }
 0x107   : > { %845 = vmatmul.mubr.f32.gmra.mrb[52].mxu0 %v516_v8 }
 0x108   : > { %1076 = vmatmul.mubr.f32.gmra.mrb[52].mxu1 %v516_v8  ;;  %850 = vmatprep.mubr.f32.mxu0 %v519_v9 }
 0x109   : > { %1080 = vmatprep.mubr.f32.mxu1 %v519_v9 }
 0x10b   : > { %851 = vmatmul.mubr.f32.gmra.mrb[54].mxu0 %v518_v10 }
 0x10c   : > { %1081 = vmatmul.mubr.f32.gmra.mrb[54].mxu1 %v518_v10  ;;  %856 = vmatprep.mubr.f32.mxu0 %v521_v11 }
 0x10d   : > { %1085 = vmatprep.mubr.f32.mxu1 %v521_v11 }
 0x10f   : > { %857 = vmatmul.mubr.f32.gmra.mrb[56].mxu0 %v520_v12 }
 0x110   : > { %1086 = vmatmul.mubr.f32.gmra.mrb[56].mxu1 %v520_v12  ;;  %862 = vmatprep.mubr.f32.mxu0 %v523_v13 }
 0x111   : > { %1090 = vmatprep.mubr.f32.mxu1 %v523_v13 }
 0x113   : > { %863 = vmatmul.mubr.f32.gmra.mrb[58].mxu0 %v522_v14 }
 0x114   : > { %1091 = vmatmul.mubr.f32.gmra.mrb[58].mxu1 %v522_v14  ;;  %868 = vmatprep.mubr.f32.mxu0 %v525_v15 }
 0x115   : > { %1095 = vmatprep.mubr.f32.mxu1 %v525_v15 }
 0x117   : > { %869 = vmatmul.mubr.f32.gmra.mrb[60].mxu0 %v524_v16 }
 0x118   : > { %1096 = vmatmul.mubr.f32.gmra.mrb[60].mxu1 %v524_v16  ;;  %874 = vmatprep.mubr.f32.mxu0 %v527_v17 }
 0x119   : > { %1100 = vmatprep.mubr.f32.mxu1 %v527_v17 }
 0x11b   : > { %875 = vmatmul.mubr.f32.gmra.mrb[62].mxu0 %v526_v18 }
 0x11c   : > { %1101 = vmatmul.mubr.f32.gmra.mrb[62].mxu1 %v526_v18 }
 0x172   : > { %v690_v27 = vpop.f32.mrb[0].mxu0 }
 0x173   : > { %v947_v28 = vpop.f32.mrb[0].mxu1  ;;  %v1414_v29 = vadd.f32 %v2419_v25, %v690_v27  ;;  %v692_v31 = vpop.f32.mrb[1].mxu0 }
 0x174   : > { %v1416_v30 = vadd.f32 %v2421_v0, %v947_v28  ;;  %v949_v32 = vpop.f32.mrb[1].mxu1  ;;  %v1415_v33 = vadd.f32 %v2423_v26, %v692_v31 }
 0x175   : > { %1510 = vst [vmem:[%s2430_s29] sm:$0xff] %v1414_v29 }
 0x176   : > { %1512 = vst [vmem:[%s2430_s29 + $0x10] sm:$0xff] %v1416_v30  ;;  %1511 = vst [vmem:[%s2430_s29 + $0x8] sm:$0xff] %v1415_v33  ;;  %v696_v34 = vpop.f32.mrb[2].mxu0 }
 0x177   : > { %v952_v35 = vpop.f32.mrb[2].mxu1  ;;  %v1417_v36 = vadd.f32 %v2419_v25, %v696_v34  ;;  %v698_v38 = vpop.f32.mrb[3].mxu0 }
 0x178   : > { %v1419_v37 = vadd.f32 %v2421_v0, %v952_v35  ;;  %v954_v39 = vpop.f32.mrb[3].mxu1  ;;  %v1418_v40 = vadd.f32 %v2423_v26, %v698_v38 }
 0x179   : > { %1513 = vst [vmem:[%s2430_s29 + $0x18] sm:$0xff] %v1417_v36 }
 0x17a   : > { %1515 = vst [vmem:[%s2430_s29 + $0x28] sm:$0xff] %v1419_v37  ;;  %1514 = vst [vmem:[%s2430_s29 + $0x20] sm:$0xff] %v1418_v40  ;;  %v702_v41 = vpop.f32.mrb[4].mxu0 }
 0x17b   : > { %v957_v42 = vpop.f32.mrb[4].mxu1  ;;  %v1420_v43 = vadd.f32 %v2419_v25, %v702_v41  ;;  %v704_v45 = vpop.f32.mrb[5].mxu0 }
 0x17c   : > { %v1422_v44 = vadd.f32 %v2421_v0, %v957_v42  ;;  %v959_v46 = vpop.f32.mrb[5].mxu1  ;;  %v1421_v47 = vadd.f32 %v2423_v26, %v704_v45 }
 0x17d   : > { %1516 = vst [vmem:[%s2430_s29 + $0x30] sm:$0xff] %v1420_v43 }
 0x17e   : > { %1518 = vst [vmem:[%s2430_s29 + $0x40] sm:$0xff] %v1422_v44  ;;  %1517 = vst [vmem:[%s2430_s29 + $0x38] sm:$0xff] %v1421_v47  ;;  %v708_v48 = vpop.f32.mrb[6].mxu0 }
 0x17f   : > { %v962_v49 = vpop.f32.mrb[6].mxu1  ;;  %v1423_v50 = vadd.f32 %v2419_v25, %v708_v48  ;;  %v710_v52 = vpop.f32.mrb[7].mxu0 }
 0x180   : > { %v1425_v51 = vadd.f32 %v2421_v0, %v962_v49  ;;  %v964_v53 = vpop.f32.mrb[7].mxu1  ;;  %v1424_v54 = vadd.f32 %v2423_v26, %v710_v52 }
 0x181   : > { %1519 = vst [vmem:[%s2430_s29 + $0x48] sm:$0xff] %v1423_v50 }
 0x182   : > { %1521 = vst [vmem:[%s2430_s29 + $0x58] sm:$0xff] %v1425_v51  ;;  %1520 = vst [vmem:[%s2430_s29 + $0x50] sm:$0xff] %v1424_v54  ;;  %v714_v55 = vpop.f32.mrb[8].mxu0 }
 0x183   : > { %v967_v56 = vpop.f32.mrb[8].mxu1  ;;  %v1426_v57 = vadd.f32 %v2419_v25, %v714_v55  ;;  %v716_v59 = vpop.f32.mrb[9].mxu0 }
 0x184   : > { %v1428_v58 = vadd.f32 %v2421_v0, %v967_v56  ;;  %v969_v60 = vpop.f32.mrb[9].mxu1  ;;  %v1427_v61 = vadd.f32 %v2423_v26, %v716_v59 }
 0x185   : > { %1522 = vst [vmem:[%s2430_s29 + $0x60] sm:$0xff] %v1426_v57 }
 0x186   : > { %1524 = vst [vmem:[%s2430_s29 + $0x70] sm:$0xff] %v1428_v58  ;;  %1523 = vst [vmem:[%s2430_s29 + $0x68] sm:$0xff] %v1427_v61  ;;  %v720_v62 = vpop.f32.mrb[10].mxu0 }
 0x187   : > { %v972_v63 = vpop.f32.mrb[10].mxu1  ;;  %v1429_v1 = vadd.f32 %v2419_v25, %v720_v62  ;;  %v722_v3 = vpop.f32.mrb[11].mxu0 }
 0x188   : > { %v1431_v2 = vadd.f32 %v2421_v0, %v972_v63  ;;  %v974_v4 = vpop.f32.mrb[11].mxu1  ;;  %v1430_v5 = vadd.f32 %v2423_v26, %v722_v3 }
 0x189   : > { %1525 = vst [vmem:[%s2430_s29 + $0x78] sm:$0xff] %v1429_v1 }
 0x18a   : > { %1527 = vst [vmem:[%s2430_s29 + $0x88] sm:$0xff] %v1431_v2  ;;  %1526 = vst [vmem:[%s2430_s29 + $0x80] sm:$0xff] %v1430_v5  ;;  %v726_v6 = vpop.f32.mrb[12].mxu0 }
 0x18b   : > { %v977_v7 = vpop.f32.mrb[12].mxu1  ;;  %v1432_v8 = vadd.f32 %v2419_v25, %v726_v6  ;;  %v728_v10 = vpop.f32.mrb[13].mxu0 }
 0x18c   : > { %v1434_v9 = vadd.f32 %v2421_v0, %v977_v7  ;;  %v979_v11 = vpop.f32.mrb[13].mxu1  ;;  %v1433_v12 = vadd.f32 %v2423_v26, %v728_v10 }
 0x18d   : > { %1528 = vst [vmem:[%s2430_s29 + $0x90] sm:$0xff] %v1432_v8 }
 0x18e   : > { %1530 = vst [vmem:[%s2430_s29 + $0xa0] sm:$0xff] %v1434_v9  ;;  %1529 = vst [vmem:[%s2430_s29 + $0x98] sm:$0xff] %v1433_v12  ;;  %v732_v13 = vpop.f32.mrb[14].mxu0 }
 0x18f   : > { %v982_v14 = vpop.f32.mrb[14].mxu1  ;;  %v1435_v15 = vadd.f32 %v2419_v25, %v732_v13  ;;  %v734_v17 = vpop.f32.mrb[15].mxu0 }
 0x190   : > { %v1437_v16 = vadd.f32 %v2421_v0, %v982_v14  ;;  %v984_v18 = vpop.f32.mrb[15].mxu1  ;;  %v1436_v19 = vadd.f32 %v2423_v26, %v734_v17 }
 0x191   : > { %1531 = vst [vmem:[%s2430_s29 + $0xa8] sm:$0xff] %v1435_v15 }
 0x192   : > { %1533 = vst [vmem:[%s2430_s29 + $0xb8] sm:$0xff] %v1437_v16  ;;  %1532 = vst [vmem:[%s2430_s29 + $0xb0] sm:$0xff] %v1436_v19  ;;  %v738_v20 = vpop.f32.mrb[16].mxu0 }
 0x193   : > { %v987_v21 = vpop.f32.mrb[16].mxu1  ;;  %v1438_v22 = vadd.f32 %v2419_v25, %v738_v20  ;;  %v740_v24 = vpop.f32.mrb[17].mxu0 }
 0x194   : > { %v1440_v23 = vadd.f32 %v2421_v0, %v987_v21  ;;  %v989_v27 = vpop.f32.mrb[17].mxu1  ;;  %v1439_v28 = vadd.f32 %v2423_v26, %v740_v24 }
 0x195   : > { %1534 = vst [vmem:[%s2430_s29 + $0xc0] sm:$0xff] %v1438_v22 }
 0x196   : > { %1536 = vst [vmem:[%s2430_s29 + $0xd0] sm:$0xff] %v1440_v23  ;;  %1535 = vst [vmem:[%s2430_s29 + $0xc8] sm:$0xff] %v1439_v28  ;;  %v744_v29 = vpop.f32.mrb[18].mxu0 }
 0x197   : > { %v992_v30 = vpop.f32.mrb[18].mxu1  ;;  %v1441_v31 = vadd.f32 %v2419_v25, %v744_v29  ;;  %v746_v33 = vpop.f32.mrb[19].mxu0 }
 0x198   : > { %v1443_v32 = vadd.f32 %v2421_v0, %v992_v30  ;;  %v994_v34 = vpop.f32.mrb[19].mxu1  ;;  %v1442_v35 = vadd.f32 %v2423_v26, %v746_v33 }
 0x199   : > { %1537 = vst [vmem:[%s2430_s29 + $0xd8] sm:$0xff] %v1441_v31 }
 0x19a   : > { %1539 = vst [vmem:[%s2430_s29 + $0xe8] sm:$0xff] %v1443_v32  ;;  %1538 = vst [vmem:[%s2430_s29 + $0xe0] sm:$0xff] %v1442_v35  ;;  %v750_v36 = vpop.f32.mrb[20].mxu0 }
 0x19b   : > { %v997_v37 = vpop.f32.mrb[20].mxu1  ;;  %v1444_v38 = vadd.f32 %v2419_v25, %v750_v36  ;;  %v752_v40 = vpop.f32.mrb[21].mxu0 }
 0x19c   : > { %v1446_v39 = vadd.f32 %v2421_v0, %v997_v37  ;;  %v999_v41 = vpop.f32.mrb[21].mxu1  ;;  %v1445_v42 = vadd.f32 %v2423_v26, %v752_v40 }
 0x19d   : > { %1540 = vst [vmem:[%s2430_s29 + $0xf0] sm:$0xff] %v1444_v38 }
 0x19e   : > { %1542 = vst [vmem:[%s2430_s29 + $0x100] sm:$0xff] %v1446_v39  ;;  %1541 = vst [vmem:[%s2430_s29 + $0xf8] sm:$0xff] %v1445_v42  ;;  %v756_v43 = vpop.f32.mrb[22].mxu0 }
 0x19f   : > { %v1002_v44 = vpop.f32.mrb[22].mxu1  ;;  %v1447_v45 = vadd.f32 %v2419_v25, %v756_v43  ;;  %v758_v47 = vpop.f32.mrb[23].mxu0 }
 0x1a0   : > { %v1449_v46 = vadd.f32 %v2421_v0, %v1002_v44  ;;  %v1004_v48 = vpop.f32.mrb[23].mxu1  ;;  %v1448_v49 = vadd.f32 %v2423_v26, %v758_v47 }
 0x1a1   : > { %1543 = vst [vmem:[%s2430_s29 + $0x108] sm:$0xff] %v1447_v45 }
 0x1a2   : > { %1545 = vst [vmem:[%s2430_s29 + $0x118] sm:$0xff] %v1449_v46  ;;  %1544 = vst [vmem:[%s2430_s29 + $0x110] sm:$0xff] %v1448_v49  ;;  %v762_v50 = vpop.f32.mrb[24].mxu0 }
 0x1a3   : > { %v1007_v51 = vpop.f32.mrb[24].mxu1  ;;  %v1450_v52 = vadd.f32 %v2419_v25, %v762_v50  ;;  %v764_v54 = vpop.f32.mrb[25].mxu0 }
 0x1a4   : > { %v1452_v53 = vadd.f32 %v2421_v0, %v1007_v51  ;;  %v1009_v55 = vpop.f32.mrb[25].mxu1  ;;  %v1451_v56 = vadd.f32 %v2423_v26, %v764_v54 }
 0x1a5   : > { %1546 = vst [vmem:[%s2430_s29 + $0x120] sm:$0xff] %v1450_v52 }
 0x1a6   : > { %1548 = vst [vmem:[%s2430_s29 + $0x130] sm:$0xff] %v1452_v53  ;;  %1547 = vst [vmem:[%s2430_s29 + $0x128] sm:$0xff] %v1451_v56  ;;  %v768_v57 = vpop.f32.mrb[26].mxu0 }
 0x1a7   : > { %v1012_v58 = vpop.f32.mrb[26].mxu1  ;;  %v1453_v59 = vadd.f32 %v2419_v25, %v768_v57  ;;  %v770_v61 = vpop.f32.mrb[27].mxu0 }
 0x1a8   : > { %v1455_v60 = vadd.f32 %v2421_v0, %v1012_v58  ;;  %v1014_v62 = vpop.f32.mrb[27].mxu1  ;;  %v1454_v63 = vadd.f32 %v2423_v26, %v770_v61 }
 0x1a9   : > { %1549 = vst [vmem:[%s2430_s29 + $0x138] sm:$0xff] %v1453_v59 }
 0x1aa   : > { %1551 = vst [vmem:[%s2430_s29 + $0x148] sm:$0xff] %v1455_v60  ;;  %1550 = vst [vmem:[%s2430_s29 + $0x140] sm:$0xff] %v1454_v63  ;;  %v774_v1 = vpop.f32.mrb[28].mxu0 }
 0x1ab   : > { %v1017_v2 = vpop.f32.mrb[28].mxu1  ;;  %v1456_v3 = vadd.f32 %v2419_v25, %v774_v1  ;;  %v776_v5 = vpop.f32.mrb[29].mxu0 }
 0x1ac   : > { %v1458_v4 = vadd.f32 %v2421_v0, %v1017_v2  ;;  %v1019_v6 = vpop.f32.mrb[29].mxu1  ;;  %v1457_v7 = vadd.f32 %v2423_v26, %v776_v5 }
 0x1ad   : > { %1552 = vst [vmem:[%s2430_s29 + $0x150] sm:$0xff] %v1456_v3 }
 0x1ae   : > { %1554 = vst [vmem:[%s2430_s29 + $0x160] sm:$0xff] %v1458_v4  ;;  %1553 = vst [vmem:[%s2430_s29 + $0x158] sm:$0xff] %v1457_v7  ;;  %v780_v8 = vpop.f32.mrb[30].mxu0 }
 0x1af   : > { %v1022_v9 = vpop.f32.mrb[30].mxu1  ;;  %v1459_v10 = vadd.f32 %v2419_v25, %v780_v8  ;;  %v782_v12 = vpop.f32.mrb[31].mxu0 }
 0x1b0   : > { %v1461_v11 = vadd.f32 %v2421_v0, %v1022_v9  ;;  %v1024_v13 = vpop.f32.mrb[31].mxu1  ;;  %v1460_v14 = vadd.f32 %v2423_v26, %v782_v12 }
 0x1b1   : > { %1555 = vst [vmem:[%s2430_s29 + $0x168] sm:$0xff] %v1459_v10 }
 0x1b2   : > { %1557 = vst [vmem:[%s2430_s29 + $0x178] sm:$0xff] %v1461_v11  ;;  %1556 = vst [vmem:[%s2430_s29 + $0x170] sm:$0xff] %v1460_v14  ;;  %v786_v15 = vpop.f32.mrb[32].mxu0 }
 0x1b3   : > { %v1027_v16 = vpop.f32.mrb[32].mxu1  ;;  %v1462_v17 = vadd.f32 %v2419_v25, %v786_v15  ;;  %v788_v19 = vpop.f32.mrb[33].mxu0 }
 0x1b4   : > { %v1464_v18 = vadd.f32 %v2421_v0, %v1027_v16  ;;  %v1029_v20 = vpop.f32.mrb[33].mxu1  ;;  %v1463_v21 = vadd.f32 %v2423_v26, %v788_v19 }
 0x1b5   : > { %1558 = vst [vmem:[%s2430_s29 + $0x180] sm:$0xff] %v1462_v17 }
 0x1b6   : > { %1560 = vst [vmem:[%s2430_s29 + $0x190] sm:$0xff] %v1464_v18  ;;  %1559 = vst [vmem:[%s2430_s29 + $0x188] sm:$0xff] %v1463_v21  ;;  %v792_v22 = vpop.f32.mrb[34].mxu0 }
 0x1b7   : > { %v1032_v23 = vpop.f32.mrb[34].mxu1  ;;  %v1465_v24 = vadd.f32 %v2419_v25, %v792_v22  ;;  %v794_v28 = vpop.f32.mrb[35].mxu0 }
 0x1b8   : > { %v1467_v27 = vadd.f32 %v2421_v0, %v1032_v23  ;;  %v1034_v29 = vpop.f32.mrb[35].mxu1  ;;  %v1466_v30 = vadd.f32 %v2423_v26, %v794_v28 }
 0x1b9   : > { %1561 = vst [vmem:[%s2430_s29 + $0x198] sm:$0xff] %v1465_v24 }
 0x1ba   : > { %1563 = vst [vmem:[%s2430_s29 + $0x1a8] sm:$0xff] %v1467_v27  ;;  %1562 = vst [vmem:[%s2430_s29 + $0x1a0] sm:$0xff] %v1466_v30  ;;  %v798_v31 = vpop.f32.mrb[36].mxu0 }
 0x1bb   : > { %v1037_v32 = vpop.f32.mrb[36].mxu1  ;;  %v1468_v33 = vadd.f32 %v2419_v25, %v798_v31  ;;  %v800_v35 = vpop.f32.mrb[37].mxu0 }
 0x1bc   : > { %v1470_v34 = vadd.f32 %v2421_v0, %v1037_v32  ;;  %v1039_v36 = vpop.f32.mrb[37].mxu1  ;;  %v1469_v37 = vadd.f32 %v2423_v26, %v800_v35 }
 0x1bd   : > { %1564 = vst [vmem:[%s2430_s29 + $0x1b0] sm:$0xff] %v1468_v33 }
 0x1be   : > { %1566 = vst [vmem:[%s2430_s29 + $0x1c0] sm:$0xff] %v1470_v34  ;;  %1565 = vst [vmem:[%s2430_s29 + $0x1b8] sm:$0xff] %v1469_v37  ;;  %v804_v38 = vpop.f32.mrb[38].mxu0 }
 0x1bf   : > { %v1042_v39 = vpop.f32.mrb[38].mxu1  ;;  %v1471_v40 = vadd.f32 %v2419_v25, %v804_v38  ;;  %v806_v42 = vpop.f32.mrb[39].mxu0 }
 0x1c0   : > { %v1473_v41 = vadd.f32 %v2421_v0, %v1042_v39  ;;  %v1044_v43 = vpop.f32.mrb[39].mxu1  ;;  %v1472_v44 = vadd.f32 %v2423_v26, %v806_v42 }
 0x1c1   : > { %1567 = vst [vmem:[%s2430_s29 + $0x1c8] sm:$0xff] %v1471_v40 }
 0x1c2   : > { %1569 = vst [vmem:[%s2430_s29 + $0x1d8] sm:$0xff] %v1473_v41  ;;  %1568 = vst [vmem:[%s2430_s29 + $0x1d0] sm:$0xff] %v1472_v44  ;;  %v810_v45 = vpop.f32.mrb[40].mxu0 }
 0x1c3   : > { %v1047_v46 = vpop.f32.mrb[40].mxu1  ;;  %v1474_v47 = vadd.f32 %v2419_v25, %v810_v45  ;;  %v812_v49 = vpop.f32.mrb[41].mxu0 }
 0x1c4   : > { %v1476_v48 = vadd.f32 %v2421_v0, %v1047_v46  ;;  %v1049_v50 = vpop.f32.mrb[41].mxu1  ;;  %v1475_v51 = vadd.f32 %v2423_v26, %v812_v49 }
 0x1c5   : > { %1570 = vst [vmem:[%s2430_s29 + $0x1e0] sm:$0xff] %v1474_v47 }
 0x1c6   : > { %1572 = vst [vmem:[%s2430_s29 + $0x1f0] sm:$0xff] %v1476_v48  ;;  %1571 = vst [vmem:[%s2430_s29 + $0x1e8] sm:$0xff] %v1475_v51  ;;  %v816_v52 = vpop.f32.mrb[42].mxu0 }
 0x1c7   : > { %v1052_v53 = vpop.f32.mrb[42].mxu1  ;;  %v1477_v54 = vadd.f32 %v2419_v25, %v816_v52  ;;  %v818_v56 = vpop.f32.mrb[43].mxu0 }
 0x1c8   : > { %v1479_v55 = vadd.f32 %v2421_v0, %v1052_v53  ;;  %v1054_v57 = vpop.f32.mrb[43].mxu1  ;;  %v1478_v58 = vadd.f32 %v2423_v26, %v818_v56 }
 0x1c9   : > { %1573 = vst [vmem:[%s2430_s29 + $0x1f8] sm:$0xff] %v1477_v54 }
 0x1ca   : > { %1575 = vst [vmem:[%s2430_s29 + $0x208] sm:$0xff] %v1479_v55  ;;  %1574 = vst [vmem:[%s2430_s29 + $0x200] sm:$0xff] %v1478_v58  ;;  %v822_v59 = vpop.f32.mrb[44].mxu0 }
 0x1cb   : > { %v1057_v60 = vpop.f32.mrb[44].mxu1  ;;  %v1480_v61 = vadd.f32 %v2419_v25, %v822_v59  ;;  %v824_v63 = vpop.f32.mrb[45].mxu0 }
 0x1cc   : > { %v1482_v62 = vadd.f32 %v2421_v0, %v1057_v60  ;;  %v1059_v1 = vpop.f32.mrb[45].mxu1  ;;  %v1481_v2 = vadd.f32 %v2423_v26, %v824_v63 }
 0x1cd   : > { %1576 = vst [vmem:[%s2430_s29 + $0x210] sm:$0xff] %v1480_v61 }
 0x1ce   : > { %1578 = vst [vmem:[%s2430_s29 + $0x220] sm:$0xff] %v1482_v62  ;;  %1577 = vst [vmem:[%s2430_s29 + $0x218] sm:$0xff] %v1481_v2  ;;  %v828_v3 = vpop.f32.mrb[46].mxu0 }
 0x1cf   : > { %v1062_v4 = vpop.f32.mrb[46].mxu1  ;;  %v1483_v5 = vadd.f32 %v2419_v25, %v828_v3  ;;  %v830_v7 = vpop.f32.mrb[47].mxu0 }
 0x1d0   : > { %v1485_v6 = vadd.f32 %v2421_v0, %v1062_v4  ;;  %v1064_v8 = vpop.f32.mrb[47].mxu1  ;;  %v1484_v9 = vadd.f32 %v2423_v26, %v830_v7 }
 0x1d1   : > { %1579 = vst [vmem:[%s2430_s29 + $0x228] sm:$0xff] %v1483_v5 }
 0x1d2   : > { %1581 = vst [vmem:[%s2430_s29 + $0x238] sm:$0xff] %v1485_v6  ;;  %1580 = vst [vmem:[%s2430_s29 + $0x230] sm:$0xff] %v1484_v9  ;;  %v834_v10 = vpop.f32.mrb[48].mxu0 }
 0x1d3   : > { %v1067_v11 = vpop.f32.mrb[48].mxu1  ;;  %v1486_v12 = vadd.f32 %v2419_v25, %v834_v10  ;;  %v836_v14 = vpop.f32.mrb[49].mxu0 }
 0x1d4   : > { %v1488_v13 = vadd.f32 %v2421_v0, %v1067_v11  ;;  %v1069_v15 = vpop.f32.mrb[49].mxu1  ;;  %v1487_v16 = vadd.f32 %v2423_v26, %v836_v14 }
 0x1d5   : > { %1582 = vst [vmem:[%s2430_s29 + $0x240] sm:$0xff] %v1486_v12 }
 0x1d6   : > { %1584 = vst [vmem:[%s2430_s29 + $0x250] sm:$0xff] %v1488_v13  ;;  %1583 = vst [vmem:[%s2430_s29 + $0x248] sm:$0xff] %v1487_v16  ;;  %v840_v17 = vpop.f32.mrb[50].mxu0 }
 0x1d7   : > { %v1072_v18 = vpop.f32.mrb[50].mxu1  ;;  %v1489_v19 = vadd.f32 %v2419_v25, %v840_v17  ;;  %v842_v21 = vpop.f32.mrb[51].mxu0 }
 0x1d8   : > { %v1491_v20 = vadd.f32 %v2421_v0, %v1072_v18  ;;  %v1074_v22 = vpop.f32.mrb[51].mxu1  ;;  %v1490_v23 = vadd.f32 %v2423_v26, %v842_v21 }
 0x1d9   : > { %1585 = vst [vmem:[%s2430_s29 + $0x258] sm:$0xff] %v1489_v19 }
 0x1da   : > { %1587 = vst [vmem:[%s2430_s29 + $0x268] sm:$0xff] %v1491_v20  ;;  %1586 = vst [vmem:[%s2430_s29 + $0x260] sm:$0xff] %v1490_v23  ;;  %v846_v24 = vpop.f32.mrb[52].mxu0 }
 0x1db   : > { %v1077_v27 = vpop.f32.mrb[52].mxu1  ;;  %v1492_v28 = vadd.f32 %v2419_v25, %v846_v24  ;;  %v848_v30 = vpop.f32.mrb[53].mxu0 }
 0x1dc   : > { %v1494_v29 = vadd.f32 %v2421_v0, %v1077_v27  ;;  %v1079_v31 = vpop.f32.mrb[53].mxu1  ;;  %v1493_v32 = vadd.f32 %v2423_v26, %v848_v30 }
 0x1dd   : > { %1588 = vst [vmem:[%s2430_s29 + $0x270] sm:$0xff] %v1492_v28 }
 0x1de   : > { %1590 = vst [vmem:[%s2430_s29 + $0x280] sm:$0xff] %v1494_v29  ;;  %1589 = vst [vmem:[%s2430_s29 + $0x278] sm:$0xff] %v1493_v32  ;;  %v852_v33 = vpop.f32.mrb[54].mxu0 }
 0x1df   : > { %v1082_v34 = vpop.f32.mrb[54].mxu1  ;;  %v1495_v35 = vadd.f32 %v2419_v25, %v852_v33  ;;  %v854_v37 = vpop.f32.mrb[55].mxu0 }
 0x1e0   : > { %v1497_v36 = vadd.f32 %v2421_v0, %v1082_v34  ;;  %v1084_v38 = vpop.f32.mrb[55].mxu1  ;;  %v1496_v39 = vadd.f32 %v2423_v26, %v854_v37 }
 0x1e1   : > { %1591 = vst [vmem:[%s2430_s29 + $0x288] sm:$0xff] %v1495_v35 }
 0x1e2   : > { %1593 = vst [vmem:[%s2430_s29 + $0x298] sm:$0xff] %v1497_v36  ;;  %1592 = vst [vmem:[%s2430_s29 + $0x290] sm:$0xff] %v1496_v39  ;;  %v858_v40 = vpop.f32.mrb[56].mxu0 }
 0x1e3   : > { %v1087_v41 = vpop.f32.mrb[56].mxu1  ;;  %v1498_v42 = vadd.f32 %v2419_v25, %v858_v40  ;;  %v860_v44 = vpop.f32.mrb[57].mxu0 }
 0x1e4   : > { %v1500_v43 = vadd.f32 %v2421_v0, %v1087_v41  ;;  %v1089_v45 = vpop.f32.mrb[57].mxu1  ;;  %v1499_v46 = vadd.f32 %v2423_v26, %v860_v44 }
 0x1e5   : > { %1594 = vst [vmem:[%s2430_s29 + $0x2a0] sm:$0xff] %v1498_v42 }
 0x1e6   : > { %1596 = vst [vmem:[%s2430_s29 + $0x2b0] sm:$0xff] %v1500_v43  ;;  %1595 = vst [vmem:[%s2430_s29 + $0x2a8] sm:$0xff] %v1499_v46  ;;  %v864_v47 = vpop.f32.mrb[58].mxu0 }
 0x1e7   : > { %v1092_v48 = vpop.f32.mrb[58].mxu1  ;;  %v1501_v49 = vadd.f32 %v2419_v25, %v864_v47  ;;  %v866_v51 = vpop.f32.mrb[59].mxu0 }
 0x1e8   : > { %v1503_v50 = vadd.f32 %v2421_v0, %v1092_v48  ;;  %v1094_v52 = vpop.f32.mrb[59].mxu1  ;;  %v1502_v53 = vadd.f32 %v2423_v26, %v866_v51 }
 0x1e9   : > { %1597 = vst [vmem:[%s2430_s29 + $0x2b8] sm:$0xff] %v1501_v49 }
 0x1ea   : > { %1599 = vst [vmem:[%s2430_s29 + $0x2c8] sm:$0xff] %v1503_v50  ;;  %1598 = vst [vmem:[%s2430_s29 + $0x2c0] sm:$0xff] %v1502_v53  ;;  %v870_v54 = vpop.f32.mrb[60].mxu0 }
 0x1eb   : > { %v1097_v55 = vpop.f32.mrb[60].mxu1  ;;  %v1504_v56 = vadd.f32 %v2419_v25, %v870_v54  ;;  %v872_v58 = vpop.f32.mrb[61].mxu0 }
 0x1ec   : > { %v1506_v57 = vadd.f32 %v2421_v0, %v1097_v55  ;;  %v1099_v59 = vpop.f32.mrb[61].mxu1  ;;  %v1505_v60 = vadd.f32 %v2423_v26, %v872_v58 }
 0x1ed   : > { %1600 = vst [vmem:[%s2430_s29 + $0x2d0] sm:$0xff] %v1504_v56 }
 0x1ee   : > { %1602 = vst [vmem:[%s2430_s29 + $0x2e0] sm:$0xff] %v1506_v57  ;;  %1601 = vst [vmem:[%s2430_s29 + $0x2d8] sm:$0xff] %v1505_v60  ;;  %v876_v61 = vpop.f32.mrb[62].mxu0 }
 0x1ef   : > { %v1102_v62 = vpop.f32.mrb[62].mxu1  ;;  %v1507_v63 = vadd.f32 %v2419_v25, %v876_v61  ;;  %v878_v2 = vpop.f32.mrb[63].mxu0 }
 0x1f0   : > { %v1509_v1 = vadd.f32 %v2421_v0, %v1102_v62  ;;  %v1104_v3 = vpop.f32.mrb[63].mxu1  ;;  %v1508_v4 = vadd.f32 %v2423_v26, %v878_v2 }
 0x1f1   : > { %1603 = vst [vmem:[%s2430_s29 + $0x2e8] sm:$0xff] %v1507_v63 }
 0x1f2   : > { %1605 = vst [vmem:[%s2430_s29 + $0x2f8] sm:$0xff] %v1509_v1  ;;  %1604 = vst [vmem:[%s2430_s29 + $0x2f0] sm:$0xff] %v1508_v4 }
 0x1f3   : > { %2019 = shalt.err (!%p2016_p0)
}
 0x1f4   : > { %s2020_s18 = scalar_lea.hbm %s2620_s28, 12288  ;;  %s2024_s23 = scalar_lea.hbm %s2680_s3, 24576 }
 0x1f5   : > { %p2021_p4 = scmp.ne.s32.totalorder %s2620_s28, %s2020_s18  ;;  %p2025_p2 = scmp.lt.u32.totalorder %s2620_s28, %s2680_s3 }
 0x1f6   : > { %p2026_p9 = scmp.lt.u32.totalorder %s2024_s23, %s2020_s18  ;;  %p2028_p11 = scmp.lt.u32.totalorder %s2020_s18, %s2620_s28 }
 0x1f7   : > { %p2022_p6 = pnand %p2021_p4, %p2702_p13 }
 0x1f8   : > { %p2027_p10 = por %p2026_p9, %p2025_p2 }
 0x1f9   : > { %p2023_p12 = pneg %p2022_p6 }
 0x1fa   : > { %p2029_p5 = por %p2028_p11, %p2027_p10 }
 0x1fc   : > { %p2030_p1 = pnand %p2029_p5, %p2023_p12 }
 0x1fe   : > { %2033 = shalt.err (!%p2030_p1)
}
 0x1ff   : > { %s2103_s29 = smov 384   ;;  %s2104_s27 = smov 768  }
 0x200   : > { %s2105_s15 = smov 24  }
 0x201   : > { %1872 = dma.vmem_to_hbm [thread:$0]  (%p2702_p13), %s2624_s8, 12288, %s2620_s28, %s1607_s22, %s2103_s29, %s2104_s27, %s2105_s15  }
 0x202 PF: > { %s1638_s19 = sand.u32 1, %s2072_s12   ;;  %p2703_p3 = scmp.ne.s32.totalorder %s2691_s25, 0 }
 0x203   : > { %p2704_p7 = scmp.ge.s32.totalorder %s2092_s17, 2  ;;  %s1639_s6 = scalar_lea.sflag [#allocation5], %s1638_s19 }
 0x205   : > { %p1883_p8 = pnand %p2704_p7, %p2703_p3 }
 0x207   : > { %2067 = dma.done.wait (!%p1883_p8), %s1639_s6, 12288  }
 0x208   : > { %2069 = vsyncadd (!%p1883_p8), %s1639_s6, 4294955008  ;;  %s20_s17 = sadd.s32 1, %s2092_s17   ;;  %s2705_s12 = smov %s2076_s13 }
 0x209   : > { %p17_p0 = scmp.ge.s32.totalorder %s20_s17, 4   ;;  %s2706_s13 = smov %s2080_s14 }
 0x20a   : > { %s2707_s14 = smov %s2252_s5  ;;  %s2708_s15 = smov %s2088_s16 }
 0x20b   : > { %s2709_s16 = smov %s2711_s4  ;;  %19 = sbr.rel (!%p17_p0) target bundleno = 7 (0x7), region = 94 }
 0x212   :  { %1644 = vsyncpa [#allocation4], 1 }
 0x213   :  { %1646 = vsyncpa [#allocation4 + $0x1], 1 }
 0x214   :  { %1647 = vsyncpa [#allocation7], 1 }
 0x215   :  { %1649 = vsyncpa [#allocation7 + $0x1], 1 }
 0x216   :  { %1650 = vsyncpa [#allocation5], 1 }
 0x217   :  { %1652 = vsyncpa [#allocation5 + $0x1], 1 }

</bundles_post_ra>
